<compile_context>
chip_gen: v6e
topology: v6e:2x2x1
jax: 0.10.0
libtpu: 0.0.40
codegen_flags: <defaults>
</compile_context>

<pallas_src>
import functools
import math

import jax
import jax.numpy as jnp
from jax.experimental import pallas as pl
from jax.experimental.pallas import tpu as pltpu

VMEM_LIMIT = 32 * 1024 * 1024  # safe scoped-VMEM request on v5e/v6e/v7x


def _pick_block(total, per_item_bytes, budget, cap=16):
    """Largest divisor of `total` whose per-block working set fits `budget`."""
    nb = int(max(1, min(total, cap, budget // max(per_item_bytes, 1))))
    while total % nb:
        nb -= 1
    return nb


# ----------------------------------------------------------------------------
# Conv 3x3 (SAME, stride 1) + fused per-channel BN statistics
# ----------------------------------------------------------------------------
def _conv3x3_kernel(x_ref, w_ref, b_ref, y_ref, stats_ref):
    nb, H, W, Cout = y_ref.shape
    K = x_ref.shape[-1]                       # 3 * Cin (dx-concat wrapper-side)
    M = nb * H * W

    def tap(dy):                              # dy slice is on an outer dim: free
        xs = x_ref[:, dy:dy + H, :, :].reshape(M, K)
        return jnp.dot(xs, w_ref[dy], preferred_element_type=jnp.float32)

    y2d = tap(0) + tap(1) + tap(2) + b_ref[...]          # (M, Cout) f32
    y_ref[...] = y2d.reshape(nb, H, W, Cout).astype(y_ref.dtype)

    # Per-block partial BN statistics (reduced across blocks in the wrapper so
    # the batch grid axis stays "parallel" / megacore-friendly).
    s = jnp.sum(y2d, axis=0, keepdims=True)
    q = jnp.sum(y2d * y2d, axis=0, keepdims=True)
    stats_ref[0] = jnp.concatenate(
        [s, q, jnp.zeros((6, Cout), jnp.float32)], axis=0)


def conv3x3_with_stats(x, w_hwio, b):
    """x: (B, H, W, Cin), w_hwio: (3, 3, Cin, Cout), b: (Cout,).
    Returns (y f32, per-channel sum(y), per-channel sum(y^2))."""
    B, H, W, Cin = x.shape
    Cout = w_hwio.shape[-1]
    Cin_p = -(-Cin // 8) * 8
    K = 3 * Cin_p
    Hp = H + 2

    x_pad = jnp.pad(x.astype(jnp.bfloat16),
                    ((0, 0), (1, 1), (1, 1), (0, Cin_p - Cin)))
    # dx-shifted copies concatenated on the channel axis -> 3 matmuls with
    # K = 3*Cin inside the kernel (no sublane-misaligned in-kernel slices).
    x_cat = jnp.concatenate(
        [x_pad[:, :, 0:W, :], x_pad[:, :, 1:W + 1, :], x_pad[:, :, 2:W + 2, :]],
        axis=-1)                                            # (B, Hp, W, K) bf16

    w = jnp.pad(w_hwio, ((0, 0), (0, 0), (0, Cin_p - Cin), (0, 0)))
    w = w.reshape(3, K, Cout).astype(jnp.bfloat16)          # rows: dx-major
    b2 = b.reshape(1, Cout).astype(jnp.float32)

    per_img = Hp * W * K * 2 + H * W * Cout * 4
    nb = _pick_block(B, per_img, budget=6 << 20, cap=16)
    nblk = B // nb

    cost = pl.CostEstimate(
        flops=2 * B * H * W * 9 * Cin_p * Cout,
        transcendentals=0,
        bytes_accessed=2 * B * Hp * W * K + 2 * 3 * K * Cout
        + 4 * B * H * W * Cout)

    y, stats = pl.pallas_call(
        _conv3x3_kernel,
        grid=(nblk,),
        in_specs=[
            pl.BlockSpec((nb, Hp, W, K), lambda i: (i, 0, 0, 0)),
            pl.BlockSpec((3, K, Cout), lambda i: (0, 0, 0)),      # resident W
            pl.BlockSpec((1, Cout), lambda i: (0, 0)),
        ],
        out_specs=(
            pl.BlockSpec((nb, H, W, Cout), lambda i: (i, 0, 0, 0)),
            pl.BlockSpec((1, 8, Cout), lambda i: (i, 0, 0)),      # partial stats
        ),
        out_shape=(
            jax.ShapeDtypeStruct((B, H, W, Cout), jnp.float32),
            jax.ShapeDtypeStruct((nblk, 8, Cout), jnp.float32),
        ),
        compiler_params=pltpu.CompilerParams(
            dimension_semantics=("parallel",),
            vmem_limit_bytes=VMEM_LIMIT),
        cost_estimate=cost,
    )(x_cat, w, b2)
    return y, stats[:, 0, :].sum(axis=0), stats[:, 1, :].sum(axis=0)


# ----------------------------------------------------------------------------
# Fused TEBN (BatchNorm3d batch stats + per-time scale p[t]) + LIF (+ avgpool)
# ----------------------------------------------------------------------------
def _tebn_lif_kernel(x_ref, scale_ref, shift_ref, o_ref, mem_ref,
                     *, T, tau, v_th, pool, C):
    # x_ref block is (nb, T, H, W/2, 2*C): the W axis is folded onto the lane
    # axis (lane-dense for C=64), LIF math is position-independent.
    nb, _, H, Wf, _ = x_ref.shape
    mem_ref[...] = jnp.zeros_like(mem_ref)
    for t in range(T):
        h = x_ref[:, t] * scale_ref[t:t + 1, :] + shift_ref[t:t + 1, :]
        mem = tau * mem_ref[...] + h
        spike = (mem > v_th).astype(jnp.float32)
        mem_ref[...] = mem * (1.0 - spike)
        if pool:
            # 2x2 average pool fused in VMEM:
            #  - W pairs are adjacent channel halves of the folded layout,
            #  - H pairs via a free outer-dim reshape.
            sw = spike[..., :C] + spike[..., C:]            # (nb, H, W/2, C)
            swr = sw.reshape(nb, H // 2, 2, Wf, C)
            o_ref[:, t] = ((swr[:, :, 0] + swr[:, :, 1]) * 0.25
                           ).astype(o_ref.dtype)
        else:
            o_ref[:, t] = spike.astype(o_ref.dtype)


def tebn_lif(y, y_sum, y_ssq, *, T, gamma, beta, p, tau,
             v_th=1.0, eps=1e-5, pool=False):
    """y: (N*T, H, W, C) N-major conv output (f32). Batch-statistics BN +
    TEBN time scale p[t] + LIF recurrence (+ optional fused 2x2 avgpool).
    Returns bf16 spikes of shape (N*T, H', W', C)."""
    B, H, W, C = y.shape
    N = B // T
    count = B * H * W
    mean = y_sum / count
    var = jnp.maximum(y_ssq / count - mean * mean, 0.0)
    inv = jax.lax.rsqrt(var + eps)
    g = gamma * inv
    scale = (p[:, None] * g[None, :]).astype(jnp.float32)             # (T, C)
    shift = (p[:, None] * (beta - g * mean)[None, :]).astype(jnp.float32)
    scale2 = jnp.tile(scale, (1, 2))                                  # folded 2C
    shift2 = jnp.tile(shift, (1, 2))

    Wf = W // 2
    x5 = y.reshape(N, T, H, Wf, 2 * C)        # free view: fold W onto lanes
    Ho, Wo, Co = (H // 2, Wf, C) if pool else (H, Wf, 2 * C)

    per_samp = (T * (H * Wf * 2 * C * 4 + Ho * Wo * Co * 2)
                + H * Wf * 2 * C * 4)
    nb = _pick_block(N, per_samp, budget=6 << 20, cap=8)

    out = pl.pallas_call(
        functools.partial(_tebn_lif_kernel, T=T, tau=tau, v_th=v_th,
                          pool=pool, C=C),
        grid=(N // nb,),
        in_specs=[
            pl.BlockSpec((nb, T, H, Wf, 2 * C), lambda n: (n, 0, 0, 0, 0)),
            pl.BlockSpec((T, 2 * C), lambda n: (0, 0)),
            pl.BlockSpec((T, 2 * C), lambda n: (0, 0)),
        ],
        out_specs=pl.BlockSpec((nb, T, Ho, Wo, Co), lambda n: (n, 0, 0, 0, 0)),
        out_shape=jax.ShapeDtypeStruct((N, T, Ho, Wo, Co), jnp.bfloat16),
        scratch_shapes=[pltpu.VMEM((nb, H, Wf, 2 * C), jnp.float32)],
        compiler_params=pltpu.CompilerParams(
            dimension_semantics=("parallel",), vmem_limit_bytes=VMEM_LIMIT),
    )(x5, scale2, shift2)

    if pool:
        return out.reshape(N * T, H // 2, W // 2, C)
    return out.reshape(N * T, H, W, C)        # un-fold: free HBM view


# ----------------------------------------------------------------------------
# Linear layer: K-reduction grid axis, f32 VMEM accumulator, bf16 operands
# ----------------------------------------------------------------------------
def _linear_kernel(x_ref, w_ref, b_ref, o_ref, acc_ref):
    k = pl.program_id(0)

    @pl.when(k == 0)
    def _():
        acc_ref[...] = jnp.zeros_like(acc_ref)

    acc_ref[...] += jnp.dot(x_ref[...], w_ref[...],
                            preferred_element_type=jnp.float32)

    @pl.when(k == pl.num_programs(0) - 1)
    def _():
        o_ref[...] = (acc_ref[...] + b_ref[...]).astype(o_ref.dtype)


def linear(x, w, b):
    """y = x @ w + b (bf16 operands, f32 accumulate, K axis tiled)."""
    B, K = x.shape
    M = w.shape[1]
    tk = K
    for cand in (2048, 1024, 512):
        if K % cand == 0:
            tk = cand
            break
    nk = K // tk
    xb = x.astype(jnp.bfloat16)
    wb = w.astype(jnp.bfloat16)
    b2 = b.reshape(1, M).astype(jnp.float32)
    cost = pl.CostEstimate(flops=2 * B * K * M, transcendentals=0,
                           bytes_accessed=2 * (B * K + K * M) + 4 * B * M)
    return pl.pallas_call(
        _linear_kernel,
        grid=(nk,),
        in_specs=[
            pl.BlockSpec((B, tk), lambda k: (0, k)),
            pl.BlockSpec((tk, M), lambda k: (k, 0)),
            pl.BlockSpec((1, M), lambda k: (0, 0)),
        ],
        out_specs=pl.BlockSpec((B, M), lambda k: (0, 0)),
        out_shape=jax.ShapeDtypeStruct((B, M), jnp.float32),
        scratch_shapes=[pltpu.VMEM((B, M), jnp.float32)],
        compiler_params=pltpu.CompilerParams(
            dimension_semantics=("arbitrary",), vmem_limit_bytes=VMEM_LIMIT),
        cost_estimate=cost,
    )(xb, wb, b2)


# ----------------------------------------------------------------------------
# Parameters and full forward pass
# ----------------------------------------------------------------------------
def init_vgg9_params(key, T=4):
    conv_cfg = [(3, 64), (64, 64), (64, 128), (128, 128),
                (128, 256), (256, 256), (256, 256)]
    convs, bns = [], []
    for cin, cout in conv_cfg:
        key, kw, kb = jax.random.split(key, 3)
        std = math.sqrt(2.0 / (9 * cout))                    # kaiming, fan_out
        w = jax.random.normal(kw, (3, 3, cin, cout), jnp.float32) * std
        b = jax.random.normal(kb, (cout,), jnp.float32) * 0.01
        convs.append((w, b))
        bns.append((jnp.ones((cout,), jnp.float32),          # BN gamma
                    jnp.zeros((cout,), jnp.float32),         # BN beta
                    jnp.ones((T,), jnp.float32)))            # TEBN p[t]

    key, k1, k2, k3, k4 = jax.random.split(key, 5)
    w_fc1 = jax.random.normal(k1, (256 * 4 * 4, 1024), jnp.float32) / 64.0
    b_fc1 = jax.random.normal(k2, (1024,), jnp.float32) * 0.01
    w_fc2 = jax.random.normal(k3, (1024, 100), jnp.float32) / 32.0
    b_fc2 = jax.random.normal(k4, (100,), jnp.float32) * 0.01

    # Fold VotingLayer (avg_pool1d k=10, s=10 over 100 logits) into fc2.
    group = jnp.arange(100) // 10
    V = jax.nn.one_hot(group, 10, dtype=jnp.float32) / 10.0
    return dict(convs=convs, bns=bns,
                fc1=(w_fc1, b_fc1), fc2=(w_fc2 @ V, b_fc2 @ V))


def vgg9_forward(x_nchw, params, *, T=4, tau=0.25, v_th=1.0):
    """x_nchw: (N, 3, 32, 32).  Returns voted logits of shape (N, T, 10)."""
    N = x_nchw.shape[0]
    x = jnp.transpose(x_nchw, (0, 2, 3, 1)).astype(jnp.float32)   # NHWC
    h = jnp.repeat(x, T, axis=0)            # input_expand, N-major (n*T + t)

    pool_after = (1, 3, 6)                  # pools after conv layers 2, 4, 7
    for li, ((w, b), (gamma, beta, p)) in enumerate(
            zip(params["convs"], params["bns"])):
        y, s, ssq = conv3x3_with_stats(h, w, b)
        h = tebn_lif(y, s, ssq, T=T, gamma=gamma, beta=beta, p=p,
                     tau=tau, v_th=v_th, pool=(li in pool_after))

    B = h.shape[0]
    feat = h.reshape(B, -1)                 # (N*T, 4*4*256) NHWC flatten order
    z = linear(feat, *params["fc1"])        # TODO(synk): Dropout = identity
    z = linear(z, *params["fc2"])           # voting folded into fc2
    return z.reshape(N, T, -1)              # (N, T, 10)


# ----------------------------------------------------------------------------
# Pure-JAX reference for the TEBN+LIF(+pool) kernel (test only)
# ----------------------------------------------------------------------------
def _tebn_lif_ref(y, *, T, gamma, beta, p, tau, v_th, pool, eps=1e-5):
    B, H, W, C = y.shape
    N = B // T
    cnt = B * H * W
    s = y.sum((0, 1, 2))
    q = (y * y).sum((0, 1, 2))
    mean = s / cnt
    var = jnp.maximum(q / cnt - mean * mean, 0.0)
    inv = jax.lax.rsqrt(var + eps)
    scale = p[:, None] * (gamma * inv)[None, :]
    shift = p[:, None] * (beta - gamma * inv * mean)[None, :]
    x5 = y.reshape(N, T, H, W, C)
    mem = jnp.zeros((N, H, W, C), jnp.float32)
    outs = []
    for t in range(T):
        h = x5[:, t] * scale[t] + shift[t]
        mem = tau * mem + h
        sp = (mem > v_th).astype(jnp.float32)
        mem = mem * (1.0 - sp)
        outs.append(sp)
    sp = jnp.stack(outs, axis=1)                          # (N, T, H, W, C)
    if pool:
        sp = sp.reshape(N, T, H // 2, 2, W // 2, 2, C).mean((3, 5))
    return sp.reshape(N * T, *sp.shape[2:])


# ----------------------------------------------------------------------------
if __name__ == "__main__":
    key = jax.random.PRNGKey(0)
    k_in, k_par, k_t = jax.random.split(key, 3)

    N, T = 2, 4
    x = jax.random.normal(k_in, (N, 3, 32, 32), jnp.float32)
    params = init_vgg9_params(k_par, T=T)

    # --- unit check: conv3x3 + fused stats vs XLA reference ------------------
    kc1, kc2, kc3, kc4, kc5 = jax.random.split(k_t, 5)
    xt = jax.random.normal(kc1, (8, 8, 8, 16), jnp.float32)
    wt = jax.random.normal(kc2, (3, 3, 16, 32), jnp.float32) * 0.1
    bt = jax.random.normal(kc3, (32,), jnp.float32) * 0.1
    y_k, s_k, q_k = conv3x3_with_stats(xt, wt, bt)
    xt_b = xt.astype(jnp.bfloat16).astype(jnp.float32)
    wt_b = wt.astype(jnp.bfloat16).astype(jnp.float32)
    y_r = jax.lax.conv_general_dilated(
        xt_b, wt_b, (1, 1), "SAME",
        dimension_numbers=("NHWC", "HWIO", "NHWC"),
        precision=jax.lax.Precision.HIGHEST) + bt
    assert jnp.allclose(y_k, y_r, atol=1e-2, rtol=1e-2), "conv3x3 mismatch"
    assert jnp.allclose(s_k, y_r.sum((0, 1, 2)), atol=1e-1, rtol=1e-2), \
        "conv sum-stat mismatch"
    assert jnp.allclose(q_k, (y_r * y_r).sum((0, 1, 2)), atol=1e-1, rtol=1e-2), \
        "conv ssq-stat mismatch"

    # --- unit check: fused TEBN + LIF (+ avgpool) vs jnp reference -----------
    yt = jax.random.normal(kc4, (8, 8, 8, 64), jnp.float32)
    st = yt.sum((0, 1, 2))
    qt = (yt * yt).sum((0, 1, 2))
    gam = jnp.full((64,), 1.2, jnp.float32)
    bet = jnp.full((64,), 0.1, jnp.float32)
    pt = jnp.linspace(0.5, 1.5, T).astype(jnp.float32)
    for pool in (False, True):
        o_k = tebn_lif(yt, st, qt, T=T, gamma=gam, beta=bet, p=pt,
                       tau=0.25, pool=pool).astype(jnp.float32)
        o_r = _tebn_lif_ref(yt, T=T, gamma=gam, beta=bet, p=pt,
                            tau=0.25, v_th=1.0, pool=pool)
        assert o_k.shape == o_r.shape, (o_k.shape, o_r.shape)
        assert float(jnp.mean(jnp.abs(o_k - o_r))) < 1e-3, "tebn_lif mismatch"

    # --- unit check: linear --------------------------------------------------
    xf = jax.random.normal(kc5, (8, 1024), jnp.float32)
    wf, bf = params["fc2"]
    lin_k = linear(xf, wf, bf)
    xf_b = xf.astype(jnp.bfloat16).astype(jnp.float32)
    wf_b = wf.astype(jnp.bfloat16).astype(jnp.float32)
    lin_r = jnp.dot(xf_b, wf_b, precision=jax.lax.Precision.HIGHEST) + bf
    assert jnp.allclose(lin_k, lin_r, atol=2e-3, rtol=2e-3), "linear mismatch"

    # --- full VGG9 forward ----------------------------------------------------
    fwd = jax.jit(functools.partial(vgg9_forward, T=T, tau=0.25))
    out = jax.block_until_ready(fwd(x, params))

    assert out.shape == (N, T, 10), out.shape
    assert bool(jnp.all(jnp.isfinite(out))), "non-finite output"
    print("KERNEL_OK")
</pallas_src>

<mosaic_0001>
module attributes {stable_mosaic.version = 11 : i64} {
  func.func @_conv3x3_kernel(%arg0: i32, %arg1: memref<8x10x8x48xbf16, #tpu.memory_space<vmem>>, %arg2: memref<3x48x32xbf16, #tpu.memory_space<vmem>>, %arg3: memref<1x32xf32, #tpu.memory_space<vmem>>, %arg4: memref<8x8x8x32xf32, #tpu.memory_space<vmem>>, %arg5: memref<1x8x32xf32, #tpu.memory_space<vmem>>) attributes {dimension_semantics = [#tpu.dimension_semantics<parallel>], iteration_bounds = array<i64: 1>, scalar_prefetch = 0 : i64, scratch_operands = 0 : i64, tpu.core_type = #tpu.core_type<tc>, window_params = [{transform_indices = @transform_0, window_bounds = array<i64: 8, 10, 8, 48>}, {pipeline_mode = #tpu.pipeline_mode<synchronous>, transform_indices = @transform_1, window_bounds = array<i64: 3, 48, 32>}, {pipeline_mode = #tpu.pipeline_mode<synchronous>, transform_indices = @transform_2, window_bounds = array<i64: 1, 32>}, {transform_indices = @transform_3, window_bounds = array<i64: 8, 8, 8, 32>}, {transform_indices = @transform_4, window_bounds = array<i64: 1, 8, 32>}]} {
    %c0 = arith.constant 0 : index
    %c0_0 = arith.constant 0 : index
    %c0_1 = arith.constant 0 : index
    %c0_2 = arith.constant 0 : index
    %0 = vector.load %arg1[%c0, %c0_0, %c0_1, %c0_2] : memref<8x10x8x48xbf16, #tpu.memory_space<vmem>>, vector<8x8x8x48xbf16>
    %1 = vector.shape_cast %0 : vector<8x8x8x48xbf16> to vector<512x48xbf16>
    %c0_3 = arith.constant 0 : index
    %c0_4 = arith.constant 0 : index
    %c0_5 = arith.constant 0 : index
    %2 = vector.load %arg2[%c0_3, %c0_4, %c0_5] : memref<3x48x32xbf16, #tpu.memory_space<vmem>>, vector<1x48x32xbf16>
    %3 = vector.shape_cast %2 : vector<1x48x32xbf16> to vector<48x32xbf16>
    %cst = arith.constant dense<0.000000e+00> : vector<512x32xf32>
    %4 = tpu.matmul %1, %3, %cst {dimension_numbers = #tpu.dot_dimension_numbers<[1], [0], [0], [1], [0, 0, 1, 1], [], []>} : vector<512x48xbf16>, vector<48x32xbf16>, vector<512x32xf32> -> vector<512x32xf32>
    %c0_6 = arith.constant 0 : index
    %c1 = arith.constant 1 : index
    %c0_7 = arith.constant 0 : index
    %c0_8 = arith.constant 0 : index
    %5 = vector.load %arg1[%c0_6, %c1, %c0_7, %c0_8] : memref<8x10x8x48xbf16, #tpu.memory_space<vmem>>, vector<8x8x8x48xbf16>
    %6 = vector.shape_cast %5 : vector<8x8x8x48xbf16> to vector<512x48xbf16>
    %c1_9 = arith.constant 1 : index
    %c0_10 = arith.constant 0 : index
    %c0_11 = arith.constant 0 : index
    %7 = vector.load %arg2[%c1_9, %c0_10, %c0_11] : memref<3x48x32xbf16, #tpu.memory_space<vmem>>, vector<1x48x32xbf16>
    %8 = vector.shape_cast %7 : vector<1x48x32xbf16> to vector<48x32xbf16>
    %cst_12 = arith.constant dense<0.000000e+00> : vector<512x32xf32>
    %9 = tpu.matmul %6, %8, %cst_12 {dimension_numbers = #tpu.dot_dimension_numbers<[1], [0], [0], [1], [0, 0, 1, 1], [], []>} : vector<512x48xbf16>, vector<48x32xbf16>, vector<512x32xf32> -> vector<512x32xf32>
    %10 = arith.addf %4, %9 : vector<512x32xf32>
    %c0_13 = arith.constant 0 : index
    %c2 = arith.constant 2 : index
    %c0_14 = arith.constant 0 : index
    %c0_15 = arith.constant 0 : index
    %11 = vector.load %arg1[%c0_13, %c2, %c0_14, %c0_15] : memref<8x10x8x48xbf16, #tpu.memory_space<vmem>>, vector<8x8x8x48xbf16>
    %12 = vector.shape_cast %11 : vector<8x8x8x48xbf16> to vector<512x48xbf16>
    %c2_16 = arith.constant 2 : index
    %c0_17 = arith.constant 0 : index
    %c0_18 = arith.constant 0 : index
    %13 = vector.load %arg2[%c2_16, %c0_17, %c0_18] : memref<3x48x32xbf16, #tpu.memory_space<vmem>>, vector<1x48x32xbf16>
    %14 = vector.shape_cast %13 : vector<1x48x32xbf16> to vector<48x32xbf16>
    %cst_19 = arith.constant dense<0.000000e+00> : vector<512x32xf32>
    %15 = tpu.matmul %12, %14, %cst_19 {dimension_numbers = #tpu.dot_dimension_numbers<[1], [0], [0], [1], [0, 0, 1, 1], [], []>} : vector<512x48xbf16>, vector<48x32xbf16>, vector<512x32xf32> -> vector<512x32xf32>
    %16 = arith.addf %10, %15 : vector<512x32xf32>
    %c0_20 = arith.constant 0 : index
    %c0_21 = arith.constant 0 : index
    %17 = vector.load %arg3[%c0_20, %c0_21] : memref<1x32xf32, #tpu.memory_space<vmem>>, vector<1x32xf32>
    %18 = vector.broadcast %17 : vector<1x32xf32> to vector<512x32xf32>
    %19 = arith.addf %16, %18 : vector<512x32xf32>
    %20 = vector.shape_cast %19 : vector<512x32xf32> to vector<8x8x8x32xf32>
    %c0_22 = arith.constant 0 : index
    %c0_23 = arith.constant 0 : index
    %c0_24 = arith.constant 0 : index
    %c0_25 = arith.constant 0 : index
    %21 = vector.load %arg4[%c0_22, %c0_23, %c0_24, %c0_25] : memref<8x8x8x32xf32, #tpu.memory_space<vmem>>, vector<8x8x8x32xf32>
    tpu.vector_store %arg4[%c0_22, %c0_23, %c0_24, %c0_25], %20 {strides = array<i32>} : memref<8x8x8x32xf32, #tpu.memory_space<vmem>>, vector<8x8x8x32xf32>,
    %cst_26 = arith.constant dense<0.000000e+00> : vector<32xf32>
    %22 = vector.multi_reduction <add>, %19, %cst_26 [0] : vector<512x32xf32> to vector<32xf32>
    %23 = vector.shape_cast %22 : vector<32xf32> to vector<1x32xf32>
    %24 = arith.mulf %19, %19 : vector<512x32xf32>
    %cst_27 = arith.constant dense<0.000000e+00> : vector<32xf32>
    %25 = vector.multi_reduction <add>, %24, %cst_27 [0] : vector<512x32xf32> to vector<32xf32>
    %26 = vector.shape_cast %25 : vector<32xf32> to vector<1x32xf32>
    %cst_28 = arith.constant 0.000000e+00 : f32
    %27 = vector.broadcast %cst_28 : f32 to vector<6x32xf32>
    %28 = tpu.concatenate %23, %26, %27 in 0 : vector<1x32xf32>, vector<1x32xf32>, vector<6x32xf32> -> vector<8x32xf32>
    %c0_29 = arith.constant 0 : index
    %c0_30 = arith.constant 0 : index
    %c0_31 = arith.constant 0 : index
    %29 = vector.load %arg5[%c0_29, %c0_30, %c0_31] : memref<1x8x32xf32, #tpu.memory_space<vmem>>, vector<1x8x32xf32>
    %30 = vector.shape_cast %29 : vector<1x8x32xf32> to vector<8x32xf32>
    %31 = vector.shape_cast %28 : vector<8x32xf32> to vector<1x8x32xf32>
    tpu.vector_store %arg5[%c0_29, %c0_30, %c0_31], %31 {strides = array<i32>} : memref<1x8x32xf32, #tpu.memory_space<vmem>>, vector<1x8x32xf32>,
    return
  }
  func.func @transform_0(%arg0: i32) -> (i32, i32, i32, i32) {
    %c0_i32 = arith.constant 0 : i32
    %c0_i32_0 = arith.constant 0 : i32
    %c0_i32_1 = arith.constant 0 : i32
    %c0_i32_2 = arith.constant 0 : i32
    return %arg0, %c0_i32, %c0_i32_0, %c0_i32_1 : i32, i32, i32, i32
  }
  func.func @transform_1(%arg0: i32) -> (i32, i32, i32) {
    %c0_i32 = arith.constant 0 : i32
    %c0_i32_0 = arith.constant 0 : i32
    %c0_i32_1 = arith.constant 0 : i32
    %c0_i32_2 = arith.constant 0 : i32
    return %c0_i32, %c0_i32_0, %c0_i32_1 : i32, i32, i32
  }
  func.func @transform_2(%arg0: i32) -> (i32, i32) {
    %c0_i32 = arith.constant 0 : i32
    %c0_i32_0 = arith.constant 0 : i32
    %c0_i32_1 = arith.constant 0 : i32
    return %c0_i32, %c0_i32_0 : i32, i32
  }
  func.func @transform_3(%arg0: i32) -> (i32, i32, i32, i32) {
    %c0_i32 = arith.constant 0 : i32
    %c0_i32_0 = arith.constant 0 : i32
    %c0_i32_1 = arith.constant 0 : i32
    %c0_i32_2 = arith.constant 0 : i32
    return %arg0, %c0_i32, %c0_i32_0, %c0_i32_1 : i32, i32, i32, i32
  }
  func.func @transform_4(%arg0: i32) -> (i32, i32, i32) {
    %c0_i32 = arith.constant 0 : i32
    %c0_i32_0 = arith.constant 0 : i32
    %c0_i32_1 = arith.constant 0 : i32
    return %arg0, %c0_i32, %c0_i32_0 : i32, i32, i32
  }
}

</mosaic_0001>

<bundles_post_ra>
// kernel: tpu_custom_call.1
= control target key start
LH: loop header
LB: loop body
LE: loop exit
PB: predicated region body
PF: predicated region fallthrough
CT: control target
= control target key end

     0   :  { %10 = vsyncpa [#allocation3], 0  ;;  %s3840_s0 = inlined_call_operand.hbm [shape: bf16[8,10,8,48], index: 0, kind: input, shape index: {}]   ;;  %s3841_s1 = inlined_call_operand.vmem [shape: bf16[3,48,32], index: 1, kind: input, shape index: {}]   ;;  %s3842_s2 = inlined_call_operand.vmem [shape: f32[1,32], index: 2, kind: input, shape index: {}]   ;;  %s3843_s3 = inlined_call_operand.hbm [shape: f32[8,8,8,32], index: 3, kind: output, shape index: {0}]   ;;  %s3844_s4 = inlined_call_operand.hbm [shape: f32[1,8,32], index: 4, kind: output, shape index: {1}]  }
   0x1   :  { %11 = vsyncpa [#allocation4], 0 }
   0x2   :  { %12 = vsyncpa [#allocation7], 0  ;;  %s3217_s15 = smov [#allocation2]  }
   0x3   :  { %s18_s16 = sshll.u32 %s3217_s15, 4  ;;  %s19_s16 = int_to_ptr.vmem [resolvable:$true] %s18_s16 }
   0x4   :  { %s3159_s17 = scalar_lea.vmem %s19_s16, 5120  ;;  %p3164_p1 = scmp.lt.s32.totalorder %s19_s16, %s19_s16 }
   0x5   :  { %p3160_p0 = scmp.ne.s32.totalorder %s19_s16, %s3159_s17  ;;  %p3165_p2 = scmp.lt.s32.totalorder %s3159_s17, %s3159_s17 }
   0x7   :  { %p3166_p3 = por %p3165_p2, %p3164_p1 }
   0x9   :  { %p3167_p4 = pnand %p3166_p3, %p3160_p0 }
   0xb   :  { %3170 = shalt.err (!%p3167_p4)
}
   0xc   :  { %s3218_s18 = smov 64   ;;  %s3219_s19 = smov 4  }
   0xd   :  { %24 = dma.hbm_to_vmem [thread:$0]  %s3840_s0, 5120, %s19_s16, [#allocation3], %s3218_s18, %s3218_s18, %s3219_s19  }
   0xe   :  { %3211 = dma.done.wait [#allocation3], 5120  }
   0xf   :  { %3212 = vsyncadd [#allocation3], 4294962176  ;;  %v3045_v0 = vld [vmem:[%s3841_s1 + $0x28] sm:$0xff]   ;;  %v3046_v1 = vld [vmem:[%s3841_s1 + $0x20] sm:$0xff]   ;;  %vm353_vm0 = vcmask 392192   ;;  %vm2072_vm1 = vcmask 261120  }
  0x10   :  { %2822 = vmatprep.subr.bf16.mxu0 %v3045_v0  ;;  %3032 = vmatprep.subr.bf16.mxu1 %v3045_v0  ;;  %v3047_v2 = vld [vmem:[%s3841_s1 + $0x18] sm:$0xff]   ;;  %v3048_v3 = vld [vmem:[#allocation2 + $0x4] sm:$0xff]   ;;  %v3052_v5 = vld [vmem:[%s3841_s1 + $0x10] sm:$0xff]  }
  0x11   :  { %2823 = vmatpush3.bf16.msra.mxu0 %v3045_v0  ;;  %3035 = vmatpush3.bf16.msra.mxu1 %v3045_v0  ;;  %v3049_v4 = vld [vmem:[#allocation2 + $0xa4] sm:$0xff]   ;;  %v3050_v7 = vld [vmem:[#allocation2 + $0xc] sm:$0xff]   ;;  %v3054_v9 = vld [vmem:[#allocation2 + $0x14] sm:$0xff]  }
  0x12   :  { %2824 = vmatprep.subr.bf16.mxu0 %v3046_v1  ;;  %3033 = vmatprep.subr.bf16.mxu1 %v3046_v1  ;;  %v3053_v6 = vld [vmem:[%s3841_s1 + $0x40] sm:$0xff]   ;;  %v3051_v8 = vld [vmem:[#allocation2 + $0xac] sm:$0xff]   ;;  %v3055_v10 = vld [vmem:[#allocation2 + $0xb4] sm:$0xff]  }
  0x13   :  { %2828 = vmatprep.mubr.msk.bf16.mxu0 %vm353_vm0, %v3048_v3  ;;  %2860 = vmatprep.mubr.msk.bf16.mxu1 %vm353_vm0, %v3049_v4  ;;  %v3056_v11 = vld [vmem:[#allocation2 + $0x1c] sm:$0xff]   ;;  %v3062_v13 = vld [vmem:[%s3841_s1 + $0x8] sm:$0xff]   ;;  %v3060_v17 = vld [vmem:[#allocation2 + $0x34] sm:$0xff]  }
  0x14   :  { %v3057_v12 = vld [vmem:[#allocation2 + $0xbc] sm:$0xff]   ;;  %v3058_v14 = vld [vmem:[#allocation2 + $0x2c] sm:$0xff]   ;;  %v3061_v18 = vld [vmem:[#allocation2 + $0xd4] sm:$0xff]  }
  0x15   :  { %2825 = vmatpush3.bf16.msra.mxu0 %v3046_v1  ;;  %3036 = vmatpush3.bf16.msra.mxu1 %v3046_v1  ;;  %v3059_v15 = vld [vmem:[#allocation2 + $0xcc] sm:$0xff]   ;;  %v3067_v16 = vld [vmem:[%s3841_s1 + $0x38] sm:$0xff]   ;;  %v3076_v21 = vld [vmem:[%s3841_s1] sm:$0xff]  }
  0x16   :  { %2826 = vmatprep.subr.bf16.mxu0 %v3047_v2  ;;  %3034 = vmatprep.subr.bf16.mxu1 %v3047_v2  ;;  %v3063_v19 = vld [vmem:[#allocation2 + $0x3c] sm:$0xff]   ;;  %v3065_v22 = vld [vmem:[#allocation2 + $0x44] sm:$0xff]   ;;  %v3077_v23 = vld [vmem:[%s3841_s1 + $0x30] sm:$0xff]  }
  0x17   :  { %v3064_v20 = vld [vmem:[#allocation2 + $0xdc] sm:$0xff]   ;;  %v3066_v24 = vld [vmem:[#allocation2 + $0xe4] sm:$0xff]   ;;  %v3068_v25 = vld [vmem:[#allocation2 + $0x54] sm:$0xff]  }
  0x18   :  { %v3069_v26 = vld [vmem:[#allocation2 + $0xf4] sm:$0xff]   ;;  %v3070_v27 = vld [vmem:[#allocation2 + $0x5c] sm:$0xff]   ;;  %v3072_v29 = vld [vmem:[#allocation2 + $0x64] sm:$0xff]  }
  0x19   :  { %2827 = vmatpush3.bf16.msra.mxu0 %v3047_v2  ;;  %3037 = vmatpush3.bf16.msra.mxu1 %v3047_v2  ;;  %v3071_v28 = vld [vmem:[#allocation2 + $0xfc] sm:$0xff]   ;;  %v3073_v30 = vld [vmem:[#allocation2 + $0x104] sm:$0xff]   ;;  %v3074_v31 = vld [vmem:[#allocation2 + $0x6c] sm:$0xff]  }
  0x1a   :  { %2892 = vmatprep.subr.bf16.mxu1 %v3052_v5  ;;  %2962 = vmatprep.subr.bf16.mxu0 %v3053_v6  ;;  %v3075_v32 = vld [vmem:[#allocation2 + $0x10c] sm:$0xff]   ;;  %v3078_v33 = vld [vmem:[#allocation2 + $0x7c] sm:$0xff]   ;;  %v3080_v35 = vld [vmem:[#allocation2 + $0x84] sm:$0xff]  }
  0x1b   :  { %v3079_v34 = vld [vmem:[#allocation2 + $0x11c] sm:$0xff]   ;;  %v3081_v36 = vld [vmem:[#allocation2 + $0x124] sm:$0xff]   ;;  %v3082_v37 = vld [vmem:[#allocation2 + $0x8c] sm:$0xff]  }
  0x1c   :  { %2829 = vmatmul.mubr.msk.bf16.vlgmr.msra.gmra.mxu0 %vm353_vm0, %v3050_v7  ;;  %2861 = vmatmul.mubr.msk.bf16.vlgmr.msra.gmra.mxu1 %vm353_vm0, %v3051_v8  ;;  %v3083_v38 = vld [vmem:[#allocation2 + $0x12c] sm:$0xff]   ;;  %v3084_v39 = vld [vmem:[#allocation2 + $0x94] sm:$0xff]   ;;  %v3086_v41 = vld [vmem:[#allocation2] sm:$0xff]  }
  0x1d   :  { %2893 = vmatpush3.bf16.msra.mxu1 %v3052_v5  ;;  %2963 = vmatpush3.bf16.msra.mxu0 %v3053_v6  ;;  %v3085_v40 = vld [vmem:[#allocation2 + $0x134] sm:$0xff]   ;;  %v3087_v42 = vld [vmem:[#allocation2 + $0x8] sm:$0xff]   ;;  %v3093_v48 = vld [vmem:[#allocation2 + $0x20] sm:$0xff]  }
  0x1e   :  { %2832 = vmatprep.mubr.msk.bf16.mxu0 %vm353_vm0, %v3054_v9  ;;  %2864 = vmatprep.mubr.msk.bf16.mxu1 %vm353_vm0, %v3055_v10  ;;  %v3088_v43 = vld [vmem:[#allocation2 + $0x8] sm:$0xff]   ;;  %v3089_v44 = vld [vmem:[#allocation2 + $0x10] sm:$0xff]   ;;  %v3091_v46 = vld [vmem:[#allocation2 + $0x18] sm:$0xff]  }
  0x1f   :  { %2894 = vmatprep.subr.bf16.mxu1 %v3062_v13  ;;  %2964 = vmatprep.subr.bf16.mxu0 %v3067_v16  ;;  %v3090_v45 = vld [vmem:[#allocation2 + $0x10] sm:$0xff]   ;;  %v3092_v47 = vld [vmem:[#allocation2 + $0x18] sm:$0xff]   ;;  %v3094_v49 = vld [vmem:[#allocation2 + $0x28] sm:$0xff]  }
  0x20   :  { %v3095_v50 = vld [vmem:[#allocation2 + $0x30] sm:$0xff]   ;;  %v3097_v52 = vld [vmem:[#allocation2 + $0x38] sm:$0xff]   ;;  %v3099_v54 = vld [vmem:[#allocation2 + $0x40] sm:$0xff]  }
  0x21   :  { %2895 = vmatpush3.bf16.msra.mxu1 %v3062_v13  ;;  %2965 = vmatpush3.bf16.msra.mxu0 %v3067_v16  ;;  %v3096_v51 = vld [vmem:[#allocation2 + $0x30] sm:$0xff]   ;;  %v3098_v53 = vld [vmem:[#allocation2 + $0x38] sm:$0xff]   ;;  %v3100_v55 = vld [vmem:[#allocation2 + $0x40] sm:$0xff]  }
  0x22   :  { %2896 = vmatprep.subr.bf16.mxu1 %v3076_v21  ;;  %2966 = vmatprep.subr.bf16.mxu0 %v3077_v23  ;;  %v3101_v56 = vld [vmem:[#allocation2 + $0x48] sm:$0xff]   ;;  %v3102_v57 = vld [vmem:[#allocation2 + $0x50] sm:$0xff]   ;;  %v3103_v58 = vld [vmem:[#allocation2 + $0x58] sm:$0xff]  }
  0x23   :  { %v3104_v59 = vld [vmem:[#allocation2 + $0x58] sm:$0xff]   ;;  %v3105_v60 = vld [vmem:[#allocation2 + $0x60] sm:$0xff]   ;;  %v3107_v62 = vld [vmem:[#allocation2 + $0x68] sm:$0xff]  }
  0x24   :  { %2833 = vmatmul.mubr.msk.bf16.gmra.mxu0 %vm353_vm0, %v3056_v11  ;;  %2865 = vmatmul.mubr.msk.bf16.gmra.mxu1 %vm353_vm0, %v3057_v12  ;;  %v3106_v61 = vld [vmem:[#allocation2 + $0x60] sm:$0xff]   ;;  %v3108_v63 = vld [vmem:[#allocation2 + $0x68] sm:$0xff]   ;;  %v3109_v0 = vld [vmem:[#allocation2 + $0x70] sm:$0xff]  }
  0x25   :  { %2836 = vmatprep.mubr.msk.bf16.mxu0 %vm353_vm0, %v3058_v14  ;;  %2868 = vmatprep.mubr.msk.bf16.mxu1 %vm353_vm0, %v3059_v15  ;;  %v3110_v1 = vld [vmem:[#allocation2 + $0x78] sm:$0xff]   ;;  %v3111_v2 = vld [vmem:[#allocation2 + $0x80] sm:$0xff]   ;;  %v3113_v4 = vld [vmem:[#allocation2 + $0x88] sm:$0xff]  }
  0x26   :  { %2897 = vmatpush3.bf16.msra.mxu1 %v3076_v21  ;;  %2967 = vmatpush3.bf16.msra.mxu0 %v3077_v23  ;;  %v3112_v3 = vld [vmem:[#allocation2 + $0x80] sm:$0xff]   ;;  %v3114_v5 = vld [vmem:[#allocation2 + $0x88] sm:$0xff]   ;;  %v3115_v6 = vld [vmem:[#allocation2 + $0x90] sm:$0xff]  }
  0x27   :  { %v3116_v7 = vld [vmem:[#allocation2 + $0x90] sm:$0xff]   ;;  %v3117_v8 = vld [vmem:[#allocation2 + $0x98] sm:$0xff]   ;;  %v3118_v9 = vld [vmem:[#allocation2 + $0xa0] sm:$0xff]  }
  0x28   :  { %v3119_v10 = vld [vmem:[#allocation2 + $0xa8] sm:$0xff]   ;;  %v3121_v12 = vld [vmem:[#allocation2 + $0xb0] sm:$0xff]   ;;  %v3123_v14 = vld [vmem:[#allocation2 + $0xb8] sm:$0xff]  }
  0x29   :  { %v3120_v11 = vld [vmem:[#allocation2 + $0xa8] sm:$0xff]   ;;  %v3122_v13 = vld [vmem:[#allocation2 + $0xb0] sm:$0xff]   ;;  %v3124_v15 = vld [vmem:[#allocation2 + $0xb8] sm:$0xff]  }
  0x2a   :  { %v3125_v16 = vld [vmem:[#allocation2 + $0xc0] sm:$0xff]   ;;  %v3130_v21 = vld [vmem:[#allocation2 + $0xd8] sm:$0xff]  }
  0x2b   :  { %v3132_v23 = vld [vmem:[#allocation2 + $0xe0] sm:$0xff]  }
  0x2c   :  { %2837 = vmatmul.mubr.msk.bf16.gmra.mxu0 %vm353_vm0, %v3060_v17  ;;  %2869 = vmatmul.mubr.msk.bf16.gmra.mxu1 %vm353_vm0, %v3061_v18  ;;  %v3126_v17 = vld [vmem:[#allocation2 + $0xc8] sm:$0xff]   ;;  %v3127_v18 = vld [vmem:[#allocation2 + $0xd0] sm:$0xff]  }
  0x2d   :  { %2840 = vmatprep.mubr.msk.bf16.mxu0 %vm353_vm0, %v3063_v19  ;;  %2872 = vmatprep.mubr.msk.bf16.mxu1 %vm353_vm0, %v3064_v20  ;;  %v3128_v19 = vld [vmem:[#allocation2 + $0xd0] sm:$0xff]   ;;  %v3129_v20 = vld [vmem:[#allocation2 + $0xd8] sm:$0xff]  }
  0x34   :  { %2841 = vmatmul.mubr.msk.bf16.gmra.mxu0 %vm353_vm0, %v3065_v22  ;;  %2873 = vmatmul.mubr.msk.bf16.gmra.mxu1 %vm353_vm0, %v3066_v24  ;;  %v3131_v22 = vld [vmem:[#allocation2 + $0xe0] sm:$0xff]   ;;  %v3133_v24 = vld [vmem:[#allocation2 + $0xe8] sm:$0xff]  }
  0x35   :  { %2844 = vmatprep.mubr.msk.bf16.mxu0 %vm353_vm0, %v3068_v25  ;;  %2876 = vmatprep.mubr.msk.bf16.mxu1 %vm353_vm0, %v3069_v26  ;;  %v3134_v25 = vld [vmem:[#allocation2 + $0xf0] sm:$0xff]   ;;  %v3135_v26 = vld [vmem:[#allocation2 + $0xf8] sm:$0xff]  }
  0x3c   :  { %2845 = vmatmul.mubr.msk.bf16.gmra.mxu0 %vm353_vm0, %v3070_v27  ;;  %2877 = vmatmul.mubr.msk.bf16.gmra.mxu1 %vm353_vm0, %v3071_v28  ;;  %v3136_v27 = vld [vmem:[#allocation2 + $0xf8] sm:$0xff]   ;;  %v3137_v28 = vld [vmem:[#allocation2 + $0x100] sm:$0xff]  }
  0x3d   :  { %2848 = vmatprep.mubr.msk.bf16.mxu0 %vm353_vm0, %v3072_v29  ;;  %2880 = vmatprep.mubr.msk.bf16.mxu1 %vm353_vm0, %v3073_v30  ;;  %v3138_v29 = vld [vmem:[#allocation2 + $0x100] sm:$0xff]   ;;  %v3139_v30 = vld [vmem:[#allocation2 + $0x108] sm:$0xff]  }
  0x44   :  { %2849 = vmatmul.mubr.msk.bf16.gmra.mxu0 %vm353_vm0, %v3074_v31  ;;  %2881 = vmatmul.mubr.msk.bf16.gmra.mxu1 %vm353_vm0, %v3075_v32  ;;  %v3140_v31 = vld [vmem:[#allocation2 + $0x108] sm:$0xff]   ;;  %v3141_v32 = vld [vmem:[#allocation2 + $0x110] sm:$0xff]  }
  0x45   :  { %2852 = vmatprep.mubr.msk.bf16.mxu0 %vm353_vm0, %v3078_v33  ;;  %2884 = vmatprep.mubr.msk.bf16.mxu1 %vm353_vm0, %v3079_v34  ;;  %v3142_v33 = vld [vmem:[#allocation2 + $0x118] sm:$0xff]   ;;  %v3143_v34 = vld [vmem:[#allocation2 + $0x120] sm:$0xff]  }
  0x4c   :  { %2853 = vmatmul.mubr.msk.bf16.gmra.mxu0 %vm353_vm0, %v3080_v35  ;;  %2885 = vmatmul.mubr.msk.bf16.gmra.mxu1 %vm353_vm0, %v3081_v36  ;;  %v3144_v35 = vld [vmem:[#allocation2 + $0x120] sm:$0xff]   ;;  %v3145_v36 = vld [vmem:[#allocation2 + $0x128] sm:$0xff]  }
  0x4d   :  { %2856 = vmatprep.mubr.msk.bf16.mxu0 %vm353_vm0, %v3082_v37  ;;  %2888 = vmatprep.mubr.msk.bf16.mxu1 %vm353_vm0, %v3083_v38  ;;  %v3146_v37 = vld [vmem:[#allocation2 + $0x128] sm:$0xff]   ;;  %v3147_v38 = vld [vmem:[#allocation2 + $0x130] sm:$0xff]  }
  0x54   :  { %2857 = vmatmul.mubr.msk.bf16.gmra.mxu0 %vm353_vm0, %v3084_v39  ;;  %2889 = vmatmul.mubr.msk.bf16.gmra.mxu1 %vm353_vm0, %v3085_v40  ;;  %v3148_v39 = vld [vmem:[#allocation2 + $0x130] sm:$0xff]   ;;  %v3149_v40 = vld [vmem:[#allocation2 + $0x138] sm:$0xff]  }
  0x55   :  { %2898 = vmatprep.mubr.msk.bf16.mxu1 %vm353_vm0, %v3086_v41  ;;  %2968 = vmatprep.mubr.msk.bf16.mxu0 %vm353_vm0, %v3087_v42 }
  0x5c   :  { %2899 = vmatmul.mubr.msk.bf16.vlgmr.msra.gmra.mxu1 %vm353_vm0, %v3088_v43  ;;  %2969 = vmatmul.mubr.msk.bf16.vlgmr.msra.gmra.mxu0 %vm353_vm0, %v3089_v44 }
  0x5d   :  { %2902 = vmatprep.mubr.msk.bf16.mxu1 %vm353_vm0, %v3090_v45  ;;  %2972 = vmatprep.mubr.msk.bf16.mxu0 %vm353_vm0, %v3091_v46 }
  0x64   :  { %2903 = vmatmul.mubr.msk.bf16.gmra.mxu1 %vm353_vm0, %v3092_v47  ;;  %2973 = vmatmul.mubr.msk.bf16.gmra.mxu0 %vm353_vm0, %v3093_v48 }
  0x65   :  { %2906 = vmatprep.mubr.msk.bf16.mxu1 %vm353_vm0, %v3094_v49  ;;  %2976 = vmatprep.mubr.msk.bf16.mxu0 %vm353_vm0, %v3095_v50 }
  0x6c   :  { %2907 = vmatmul.mubr.msk.bf16.gmra.mxu1 %vm353_vm0, %v3096_v51  ;;  %2977 = vmatmul.mubr.msk.bf16.gmra.mxu0 %vm353_vm0, %v3097_v52 }
  0x6d   :  { %2910 = vmatprep.mubr.msk.bf16.mxu1 %vm353_vm0, %v3098_v53  ;;  %2980 = vmatprep.mubr.msk.bf16.mxu0 %vm353_vm0, %v3099_v54 }
  0x74   :  { %2911 = vmatmul.mubr.msk.bf16.gmra.mxu1 %vm353_vm0, %v3100_v55  ;;  %2981 = vmatmul.mubr.msk.bf16.gmra.mxu0 %vm353_vm0, %v3101_v56 }
  0x75   :  { %2914 = vmatprep.mubr.msk.bf16.mxu1 %vm353_vm0, %v3102_v57  ;;  %2984 = vmatprep.mubr.msk.bf16.mxu0 %vm353_vm0, %v3103_v58 }
  0x7c   :  { %2915 = vmatmul.mubr.msk.bf16.gmra.mxu1 %vm353_vm0, %v3104_v59  ;;  %2985 = vmatmul.mubr.msk.bf16.gmra.mxu0 %vm353_vm0, %v3105_v60 }
  0x7d   :  { %2918 = vmatprep.mubr.msk.bf16.mxu1 %vm353_vm0, %v3106_v61  ;;  %2988 = vmatprep.mubr.msk.bf16.mxu0 %vm353_vm0, %v3107_v62 }
  0x84   :  { %2919 = vmatmul.mubr.msk.bf16.gmra.mxu1 %vm353_vm0, %v3108_v63  ;;  %2989 = vmatmul.mubr.msk.bf16.gmra.mxu0 %vm353_vm0, %v3109_v0 }
  0x85   :  { %2922 = vmatprep.mubr.msk.bf16.mxu1 %vm353_vm0, %v3110_v1  ;;  %2992 = vmatprep.mubr.msk.bf16.mxu0 %vm353_vm0, %v3111_v2 }
  0x8c   :  { %2923 = vmatmul.mubr.msk.bf16.gmra.mxu1 %vm353_vm0, %v3112_v3  ;;  %2993 = vmatmul.mubr.msk.bf16.gmra.mxu0 %vm353_vm0, %v3113_v4 }
  0x8d   :  { %2926 = vmatprep.mubr.msk.bf16.mxu1 %vm353_vm0, %v3114_v5  ;;  %2996 = vmatprep.mubr.msk.bf16.mxu0 %vm353_vm0, %v3115_v6 }
  0x94   :  { %2927 = vmatmul.mubr.msk.bf16.gmra.mxu1 %vm353_vm0, %v3116_v7  ;;  %2997 = vmatmul.mubr.msk.bf16.gmra.mxu0 %vm353_vm0, %v3117_v8 }
  0x95   :  { %2930 = vmatprep.mubr.msk.bf16.mxu1 %vm353_vm0, %v3118_v9  ;;  %3000 = vmatprep.mubr.msk.bf16.mxu0 %vm353_vm0, %v3119_v10 }
  0x9c   :  { %2931 = vmatmul.mubr.msk.bf16.gmra.mxu1 %vm353_vm0, %v3120_v11  ;;  %3001 = vmatmul.mubr.msk.bf16.gmra.mxu0 %vm353_vm0, %v3121_v12 }
  0x9d   :  { %2934 = vmatprep.mubr.msk.bf16.mxu1 %vm353_vm0, %v3122_v13  ;;  %3004 = vmatprep.mubr.msk.bf16.mxu0 %vm353_vm0, %v3123_v14 }
  0xa4   :  { %2935 = vmatmul.mubr.msk.bf16.gmra.mxu1 %vm353_vm0, %v3124_v15  ;;  %3005 = vmatmul.mubr.msk.bf16.gmra.mxu0 %vm353_vm0, %v3125_v16 }
  0xa5   :  { %2938 = vmatprep.mubr.msk.bf16.mxu1 %vm353_vm0, %v3126_v17  ;;  %3008 = vmatprep.mubr.msk.bf16.mxu0 %vm353_vm0, %v3127_v18 }
  0xac   :  { %2939 = vmatmul.mubr.msk.bf16.gmra.mxu1 %vm353_vm0, %v3128_v19  ;;  %3009 = vmatmul.mubr.msk.bf16.gmra.mxu0 %vm353_vm0, %v3129_v20 }
  0xad   :  { %2942 = vmatprep.mubr.msk.bf16.mxu1 %vm353_vm0, %v3130_v21  ;;  %3012 = vmatprep.mubr.msk.bf16.mxu0 %vm353_vm0, %v3131_v22 }
  0xb4   :  { %2943 = vmatmul.mubr.msk.bf16.gmra.mxu1 %vm353_vm0, %v3132_v23  ;;  %3013 = vmatmul.mubr.msk.bf16.gmra.mxu0 %vm353_vm0, %v3133_v24 }
  0xb5   :  { %2946 = vmatprep.mubr.msk.bf16.mxu1 %vm353_vm0, %v3134_v25  ;;  %3016 = vmatprep.mubr.msk.bf16.mxu0 %vm353_vm0, %v3135_v26 }
  0xbc   :  { %2947 = vmatmul.mubr.msk.bf16.gmra.mxu1 %vm353_vm0, %v3136_v27  ;;  %3017 = vmatmul.mubr.msk.bf16.gmra.mxu0 %vm353_vm0, %v3137_v28 }
  0xbd   :  { %2950 = vmatprep.mubr.msk.bf16.mxu1 %vm353_vm0, %v3138_v29  ;;  %3020 = vmatprep.mubr.msk.bf16.mxu0 %vm353_vm0, %v3139_v30 }
  0xc4   :  { %2951 = vmatmul.mubr.msk.bf16.gmra.mxu1 %vm353_vm0, %v3140_v31  ;;  %3021 = vmatmul.mubr.msk.bf16.gmra.mxu0 %vm353_vm0, %v3141_v32 }
  0xc5   :  { %2954 = vmatprep.mubr.msk.bf16.mxu1 %vm353_vm0, %v3142_v33  ;;  %3024 = vmatprep.mubr.msk.bf16.mxu0 %vm353_vm0, %v3143_v34 }
  0xcc   :  { %2955 = vmatmul.mubr.msk.bf16.gmra.mxu1 %vm353_vm0, %v3144_v35  ;;  %3025 = vmatmul.mubr.msk.bf16.gmra.mxu0 %vm353_vm0, %v3145_v36 }
  0xcd   :  { %2958 = vmatprep.mubr.msk.bf16.mxu1 %vm353_vm0, %v3146_v37  ;;  %3028 = vmatprep.mubr.msk.bf16.mxu0 %vm353_vm0, %v3147_v38 }
  0xd4   :  { %2959 = vmatmul.mubr.msk.bf16.gmra.mxu1 %vm353_vm0, %v3148_v39  ;;  %3029 = vmatmul.mubr.msk.bf16.gmra.mxu0 %vm353_vm0, %v3149_v40 }
  0xdc   :  { %v3375_v41 = vpop.f32.mrf.mxu0  ;;  %v3377_v42 = vpop.f32.mrf.mxu1 }
  0xde   :  { %v3379_v43 = vpop.f32.mrf.mxu0  ;;  %v3381_v44 = vpop.f32.mrf.mxu1 }
  0xe0   :  { %v3383_v45 = vpop.f32.mrf.mxu0  ;;  %v3385_v46 = vpop.f32.mrf.mxu1 }
  0xe2   :  { %v3387_v47 = vpop.f32.mrf.mxu0  ;;  %v3389_v48 = vpop.f32.mrf.mxu1 }
  0xe4   :  { %v3391_v49 = vpop.f32.mrf.mxu0  ;;  %v3393_v50 = vpop.f32.mrf.mxu1 }
  0xe6   :  { %v3395_v51 = vpop.f32.mrf.mxu0  ;;  %v3397_v52 = vpop.f32.mrf.mxu1 }
  0xe8   :  { %v3399_v53 = vpop.f32.mrf.mxu0  ;;  %v3401_v54 = vpop.f32.mrf.mxu1 }
  0xea   :  { %v3403_v55 = vpop.f32.mrf.mxu0  ;;  %v3405_v56 = vpop.f32.mrf.mxu1 }
  0xec   :  { %v3407_v57 = vpop.f32.mrf.mxu0  ;;  %v3409_v58 = vpop.f32.mrf.mxu1 }
  0xee   :  { %v3411_v59 = vpop.f32.mrf.mxu0  ;;  %v3413_v60 = vpop.f32.mrf.mxu1 }
  0xf0   :  { %v3415_v61 = vpop.f32.mrf.mxu0  ;;  %v3417_v62 = vpop.f32.mrf.mxu1 }
  0xf2   :  { %v3419_v63 = vpop.f32.mrf.mxu0  ;;  %v3421_v0 = vpop.f32.mrf.mxu1 }
  0xf3   :  { %3845 = vst [vmem:[#allocation11_spill] sm:$0xff] %v3421_v0 }
  0xf4   :  { %v3423_v1 = vpop.f32.mrf.mxu0  ;;  %v3425_v2 = vpop.f32.mrf.mxu1 }
  0xf5   :  { %3846 = vst [vmem:[#allocation12_spill] sm:$0xff] %v3425_v2 }
  0xf6   :  { %v3427_v3 = vpop.f32.mrf.mxu0  ;;  %v3429_v4 = vpop.f32.mrf.mxu1 }
  0xf7   :  { %3847 = vst [vmem:[#allocation13_spill] sm:$0xff] %v3429_v4 }
  0xf8   :  { %v3431_v5 = vpop.f32.mrf.mxu0  ;;  %v3433_v6 = vpop.f32.mrf.mxu1 }
  0xf9   :  { %3848 = vst [vmem:[#allocation14_spill] sm:$0xff] %v3433_v6 }
  0xfa   :  { %v3435_v7 = vpop.f32.mrf.mxu0  ;;  %v3437_v8 = vpop.f32.mrf.mxu1 }
  0xfb   :  { %3849 = vst [vmem:[#allocation15_spill] sm:$0xff] %v3437_v8 }
  0xfc   :  { %v3439_v9 = vpop.f32.mrf.mxu0  ;;  %v3441_v10 = vpop.f32.mrf.mxu1 }
  0xfd   :  { %3850 = vst [vmem:[#allocation16_spill] sm:$0xff] %v3441_v10 }
  0xfe   :  { %v3443_v11 = vpop.f32.mrf.mxu0  ;;  %v3445_v12 = vpop.f32.mrf.mxu1 }
  0xff   :  { %3851 = vst [vmem:[#allocation17_spill] sm:$0xff] %v3445_v12 }
 0x100   :  { %v3447_v13 = vpop.f32.mrf.mxu0  ;;  %v3449_v14 = vpop.f32.mrf.mxu1 }
 0x101   :  { %3852 = vst [vmem:[#allocation18_spill] sm:$0xff] %v3449_v14 }
 0x102   :  { %v3451_v15 = vpop.f32.mrf.mxu0  ;;  %v3453_v16 = vpop.f32.mrf.mxu1 }
 0x103   :  { %3853 = vst [vmem:[#allocation19_spill] sm:$0xff] %v3453_v16 }
 0x104   :  { %v3455_v17 = vpop.f32.mrf.mxu0  ;;  %v3457_v18 = vpop.f32.mrf.mxu1 }
 0x105   :  { %3854 = vst [vmem:[#allocation20_spill] sm:$0xff] %v3457_v18 }
 0x106   :  { %v3459_v19 = vpop.f32.mrf.mxu0  ;;  %v3461_v20 = vpop.f32.mrf.mxu1 }
 0x107   :  { %3855 = vst [vmem:[#allocation21_spill] sm:$0xff] %v3461_v20 }
 0x108   :  { %v3463_v21 = vpop.f32.mrf.mxu0  ;;  %v3465_v22 = vpop.f32.mrf.mxu1 }
 0x109   :  { %3856 = vst [vmem:[#allocation22_spill] sm:$0xff] %v3465_v22 }
 0x10a   :  { %v3467_v23 = vpop.f32.mrf.mxu0  ;;  %v3469_v24 = vpop.f32.mrf.mxu1 }
 0x10b   :  { %3857 = vst [vmem:[#allocation23_spill] sm:$0xff] %v3469_v24 }
 0x10c   :  { %v3471_v25 = vpop.f32.mrf.mxu0  ;;  %v3473_v26 = vpop.f32.mrf.mxu1 }
 0x10d   :  { %3858 = vst [vmem:[#allocation24_spill] sm:$0xff] %v3473_v26 }
 0x10e   :  { %v3475_v27 = vpop.f32.mrf.mxu0  ;;  %v3477_v28 = vpop.f32.mrf.mxu1 }
 0x10f   :  { %3859 = vst [vmem:[#allocation25_spill] sm:$0xff] %v3477_v28 }
 0x110   :  { %v3479_v29 = vpop.f32.mrf.mxu0  ;;  %v3481_v30 = vpop.f32.mrf.mxu1 }
 0x111   :  { %3860 = vst [vmem:[#allocation26_spill] sm:$0xff] %v3481_v30 }
 0x112   :  { %v3483_v31 = vpop.f32.mrf.mxu0  ;;  %v3485_v32 = vpop.f32.mrf.mxu1 }
 0x113   :  { %3861 = vst [vmem:[#allocation27_spill] sm:$0xff] %v3485_v32 }
 0x114   :  { %v3487_v33 = vpop.f32.mrf.mxu0  ;;  %v3489_v34 = vpop.f32.mrf.mxu1 }
 0x115   :  { %3862 = vst [vmem:[#allocation28_spill] sm:$0xff] %v3489_v34  ;;  %v3507_v34 = vld [vmem:[%s3842_s2] ss:$0 sm:$0xff] }
 0x116   :  { %v3491_v35 = vpop.f32.mrf.mxu0  ;;  %v3493_v36 = vpop.f32.mrf.mxu1 }
 0x117   :  { %3863 = vst [vmem:[#allocation29_spill] sm:$0xff] %v3493_v36 }
 0x118   :  { %v3495_v37 = vpop.f32.mrf.mxu0  ;;  %v3497_v38 = vpop.f32.mrf.mxu1 }
 0x119   :  { %3864 = vst [vmem:[#allocation30_spill] sm:$0xff] %v3497_v38 }
 0x11a   :  { %v3499_v39 = vpop.f32.mrf.mxu0  ;;  %v3501_v40 = vpop.f32.mrf.mxu1 }
 0x11b   :  { %3865 = vst [vmem:[#allocation31_spill] sm:$0xff] %v3501_v40 }
 0x11c   :  { %v2900_v30 = vpop.f32.mrf.mxu1  ;;  %v2970_v28 = vpop.f32.mrf.mxu0 }
 0x11d   :  { %v1056_v32 = vadd.f32 %v2900_v30, %v3375_v41 }
 0x11e   :  { %v1047_v26 = vpop.f32.mrf.mxu1  ;;  %v1682_v24 = vpop.f32.mrf.mxu0 }
 0x11f   :  { %v1939_v36 = vadd.f32 %v2970_v28, %v1056_v32  ;;  %v1048_v22 = vadd.f32 %v1047_v26, %v3379_v43 }
 0x120   :  { %v2901_v38 = vpop.f32.mrf.mxu1  ;;  %v2971_v20 = vpop.f32.mrf.mxu0 }
 0x121   :  { %v2010_v18 = vadd.f32 %v3507_v34, %v1939_v36  ;;  %v1937_v40 = vadd.f32 %v1682_v24, %v1048_v22  ;;  %v1059_v16 = vadd.f32 %v2901_v38, %v3383_v45 }
 0x122   :  { %v1050_v14 = vpop.f32.mrf.mxu1  ;;  %v1685_v41 = vpop.f32.mrf.mxu0 }
 0x123   :  { %2075 = vst.msk [vmem:[#allocation5 + $0x10] sm:$0xff] %vm2072_vm1, %v2010_v18  ;;  %v2008_v30 = vadd.f32 %v3507_v34, %v1937_v40  ;;  %v1940_v12 = vadd.f32 %v2971_v20, %v1059_v16  ;;  %v1051_v10 = vadd.f32 %v1050_v14, %v3387_v47  ;;  %v2272_v38 = vmul.f32 %v2010_v18, %v2010_v18 }
 0x124   :  { %v2904_v28 = vpop.f32.mrf.mxu1  ;;  %v2974_v32 = vpop.f32.mrf.mxu0 }
 0x125   :  { %2073 = vst.msk [vmem:[#allocation5] sm:$0xff] %vm2072_vm1, %v2008_v30  ;;  %v2011_v43 = vadd.f32 %v3507_v34, %v1940_v12  ;;  %v1938_v26 = vadd.f32 %v1685_v41, %v1051_v10  ;;  %v1072_v22 = vadd.f32 %v2904_v28, %v3391_v49  ;;  %v2270_v40 = vmul.f32 %v2008_v30, %v2008_v30 }
 0x126   :  { %v1063_v24 = vpop.f32.mrf.mxu1  ;;  %v1698_v45 = vpop.f32.mrf.mxu0  ;;  %v2137_v8 = vsel %vm2072_vm1, %v2008_v30, 0.0  ;;  %v2140_v30 = vsel %vm2072_vm1, %v2010_v18, 0.0 }
 0x127   :  { %2076 = vst.msk [vmem:[#allocation5 + $0x18] sm:$0xff] %vm2072_vm1, %v2011_v43  ;;  %v1064_v36 = vadd.f32 %v1063_v24, %v3395_v51  ;;  %v2009_v16 = vadd.f32 %v3507_v34, %v1938_v26  ;;  %v1943_v47 = vadd.f32 %v2974_v32, %v1072_v22  ;;  %v2273_v12 = vmul.f32 %v2011_v43, %v2011_v43 }
 0x128   :  { %v2905_v14 = vpop.f32.mrf.mxu1  ;;  %v2975_v20 = vpop.f32.mrf.mxu0 }
 0x129   :  { %v1941_v6 = vadd.f32 %v1698_v45, %v1064_v36  ;;  %v1075_v10 = vadd.f32 %v2905_v14, %v3399_v53  ;;  %2074 = vst.msk [vmem:[#allocation5 + $0x8] sm:$0xff] %vm2072_vm1, %v2009_v16  ;;  %v2138_v49 = vsel %vm2072_vm1, %v2009_v16, 0.0  ;;  %v2271_v41 = vmul.f32 %v2009_v16, %v2009_v16 }
 0x12a   :  { %v2014_v51 = vadd.f32 %v3507_v34, %v1943_v47  ;;  %v1066_v28 = vpop.f32.mrf.mxu1  ;;  %v1701_v24 = vpop.f32.mrf.mxu0  ;;  %v2139_v4 = vadd.f32 %v2138_v49, %v2137_v8  ;;  %v2337_v53 = vsel %vm2072_vm1, %v2272_v38, 0.0  ;;  %v2334_v45 = vsel %vm2072_vm1, %v2270_v40, 0.0 }
 0x12b   :  { %v2012_v32 = vadd.f32 %v3507_v34, %v1941_v6  ;;  %v1944_v26 = vadd.f32 %v2975_v20, %v1075_v10  ;;  %v1067_v22 = vadd.f32 %v1066_v28, %v3403_v55  ;;  %v2335_v36 = vsel %vm2072_vm1, %v2271_v41, 0.0 }
 0x12c   :  { %2079 = vst.msk [vmem:[#allocation5 + $0x30] sm:$0xff] %vm2072_vm1, %v2014_v51  ;;  %v2908_v16 = vpop.f32.mrf.mxu1  ;;  %v2978_v47 = vpop.f32.mrf.mxu0  ;;  %v2142_v14 = vsel %vm2072_vm1, %v2011_v43, 0.0  ;;  %v2141_v8 = vadd.f32 %v2140_v30, %v2139_v4  ;;  %v2336_v49 = vadd.f32 %v2335_v36, %v2334_v45  ;;  %v2339_v55 = vsel %vm2072_vm1, %v2273_v12, 0.0 }
 0x12d   :  { %2077 = vst.msk [vmem:[#allocation5 + $0x20] sm:$0xff] %vm2072_vm1, %v2012_v32  ;;  %v2274_v6 = vmul.f32 %v2012_v32, %v2012_v32  ;;  %v2015_v18 = vadd.f32 %v3507_v34, %v1944_v26  ;;  %v1942_v38 = vadd.f32 %v1701_v24, %v1067_v22  ;;  %v1088_v40 = vadd.f32 %v2908_v16, %v3407_v57 }
 0x12e   :  { %v1079_v20 = vpop.f32.mrf.mxu1  ;;  %v1714_v10 = vpop.f32.mrf.mxu0  ;;  %v2338_v41 = vadd.f32 %v2337_v53, %v2336_v49  ;;  %v2276_v28 = vmul.f32 %v2014_v51, %v2014_v51  ;;  %v2143_v2 = vadd.f32 %v2142_v14, %v2141_v8  ;;  %v2144_v4 = vsel %vm2072_vm1, %v2012_v32, 0.0 }
 0x12f   :  { %v1080_v0 = vadd.f32 %v1079_v20, %v3411_v59  ;;  %v2341_v43 = vsel %vm2072_vm1, %v2274_v6, 0.0  ;;  %2080 = vst.msk [vmem:[#allocation5 + $0x38] sm:$0xff] %vm2072_vm1, %v2015_v18  ;;  %v2013_v12 = vadd.f32 %v3507_v34, %v1942_v38  ;;  %v1947_v30 = vadd.f32 %v2978_v47, %v1088_v40 }
 0x130   :  { %v2909_v26 = vpop.f32.mrf.mxu1  ;;  %v2979_v24 = vpop.f32.mrf.mxu0  ;;  %v2145_v22 = vadd.f32 %v2144_v4, %v2143_v2  ;;  %v2340_v57 = vadd.f32 %v2339_v55, %v2338_v41  ;;  %v2277_v36 = vmul.f32 %v2015_v18, %v2015_v18  ;;  %v2148_v2 = vsel %vm2072_vm1, %v2014_v51, 0.0 }
 0x131   :  { %v1945_v45 = vadd.f32 %v1714_v10, %v1080_v0  ;;  %v1091_v53 = vadd.f32 %v2909_v26, %v3415_v61  ;;  %2078 = vst.msk [vmem:[#allocation5 + $0x28] sm:$0xff] %vm2072_vm1, %v2013_v12  ;;  %v2146_v59 = vsel %vm2072_vm1, %v2013_v12, 0.0  ;;  %v2275_v32 = vmul.f32 %v2013_v12, %v2013_v12 }
 0x132   :  { %v2018_v16 = vadd.f32 %v3507_v34, %v1947_v30  ;;  %v1082_v14 = vpop.f32.mrf.mxu1  ;;  %v1717_v8 = vpop.f32.mrf.mxu0  ;;  %v2342_v49 = vadd.f32 %v2341_v43, %v2340_v57  ;;  %v2147_v6 = vadd.f32 %v2146_v59, %v2145_v22  ;;  %v2345_v0 = vsel %vm2072_vm1, %v2276_v28, 0.0 }
 0x133   :  { %v2016_v47 = vadd.f32 %v3507_v34, %v1945_v45  ;;  %v1948_v38 = vadd.f32 %v2979_v24, %v1091_v53  ;;  %v2343_v61 = vsel %vm2072_vm1, %v2275_v32, 0.0  ;;  %v1083_v55 = vadd.f32 %v1082_v14, %v3419_v63 }
 0x134   :  { %2083 = vst.msk [vmem:[#allocation5 + $0x50] sm:$0xff] %vm2072_vm1, %v2018_v16  ;;  %v2912_v40 = vpop.f32.mrf.mxu1  ;;  %v2982_v20 = vpop.f32.mrf.mxu0  ;;  %v2150_v10 = vsel %vm2072_vm1, %v2015_v18, 0.0  ;;  %v2149_v41 = vadd.f32 %v2148_v2, %v2147_v6  ;;  %v2344_v4 = vadd.f32 %v2343_v61, %v2342_v49  ;;  %v2347_v12 = vsel %vm2072_vm1, %v2277_v36, 0.0 }
 0x135   :  { %2081 = vst.msk [vmem:[#allocation5 + $0x40] sm:$0xff] %vm2072_vm1, %v2016_v47  ;;  %v2278_v43 = vmul.f32 %v2016_v47, %v2016_v47  ;;  %v2019_v51 = vadd.f32 %v3507_v34, %v1948_v38  ;;  %v1946_v28 = vadd.f32 %v1717_v8, %v1083_v55  ;;  %v1104_v30 = vadd.f32 %v2912_v40, %v3423_v1 }
 0x136   :  { %v1095_v26 = vpop.f32.mrf.mxu1  ;;  %v1730_v24 = vpop.f32.mrf.mxu0  ;;  %v2346_v22 = vadd.f32 %v2345_v0, %v2344_v4  ;;  %v2280_v63 = vmul.f32 %v2018_v16, %v2018_v16  ;;  %v2151_v57 = vadd.f32 %v2150_v10, %v2149_v41  ;;  %v2152_v18 = vsel %vm2072_vm1, %v2016_v47, 0.0 }
 0x137   :  { %v1096_v45 = vadd.f32 %v1095_v26, %v3427_v3  ;;  %v2349_v53 = vsel %vm2072_vm1, %v2278_v43, 0.0  ;;  %2084 = vst.msk [vmem:[#allocation5 + $0x58] sm:$0xff] %vm2072_vm1, %v2019_v51  ;;  %v2017_v36 = vadd.f32 %v3507_v34, %v1946_v28  ;;  %v1951_v59 = vadd.f32 %v2982_v20, %v1104_v30 }
 0x138   :  { %v2913_v32 = vpop.f32.mrf.mxu1  ;;  %v2983_v14 = vpop.f32.mrf.mxu0  ;;  %v2153_v8 = vadd.f32 %v2152_v18, %v2151_v57  ;;  %v2348_v1 = vadd.f32 %v2347_v12, %v2346_v22  ;;  %v2281_v38 = vmul.f32 %v2019_v51, %v2019_v51  ;;  %v2156_v41 = vsel %vm2072_vm1, %v2018_v16, 0.0 }
 0x139   :  { %v1949_v49 = vadd.f32 %v1730_v24, %v1096_v45  ;;  %v1107_v6 = vadd.f32 %v2913_v32, %v3431_v5  ;;  %2082 = vst.msk [vmem:[#allocation5 + $0x48] sm:$0xff] %vm2072_vm1, %v2017_v36  ;;  %v2154_v3 = vsel %vm2072_vm1, %v2017_v36, 0.0  ;;  %v2279_v47 = vmul.f32 %v2017_v36, %v2017_v36 }
 0x13a   :  { %v2022_v2 = vadd.f32 %v3507_v34, %v1951_v59  ;;  %v1098_v0 = vpop.f32.mrf.mxu1  ;;  %v1733_v61 = vpop.f32.mrf.mxu0  ;;  %v2350_v55 = vadd.f32 %v2349_v53, %v2348_v1  ;;  %v2155_v40 = vadd.f32 %v2154_v3, %v2153_v8  ;;  %v2353_v4 = vsel %vm2072_vm1, %v2280_v63, 0.0 }
 0x13b   :  { %v2020_v20 = vadd.f32 %v3507_v34, %v1949_v49  ;;  %v1952_v10 = vadd.f32 %v2983_v14, %v1107_v6  ;;  %v2351_v5 = vsel %vm2072_vm1, %v2279_v47, 0.0  ;;  %v1099_v43 = vadd.f32 %v1098_v0, %v3435_v7 }
 0x13c   :  { %2087 = vst.msk [vmem:[#allocation5 + $0x70] sm:$0xff] %vm2072_vm1, %v2022_v2  ;;  %v2916_v12 = vpop.f32.mrf.mxu1  ;;  %v2986_v28 = vpop.f32.mrf.mxu0  ;;  %v2158_v30 = vsel %vm2072_vm1, %v2019_v51, 0.0  ;;  %v2157_v26 = vadd.f32 %v2156_v41, %v2155_v40  ;;  %v2352_v24 = vadd.f32 %v2351_v5, %v2350_v55  ;;  %v2355_v57 = vsel %vm2072_vm1, %v2281_v38, 0.0 }
 0x13d   :  { %2085 = vst.msk [vmem:[#allocation5 + $0x60] sm:$0xff] %vm2072_vm1, %v2020_v20  ;;  %v2282_v22 = vmul.f32 %v2020_v20, %v2020_v20  ;;  %v2023_v16 = vadd.f32 %v3507_v34, %v1952_v10  ;;  %v1950_v63 = vadd.f32 %v1733_v61, %v1099_v43  ;;  %v1120_v45 = vadd.f32 %v2916_v12, %v3439_v9 }
 0x13e   :  { %v1111_v18 = vpop.f32.mrf.mxu1  ;;  %v1746_v53 = vpop.f32.mrf.mxu0  ;;  %v2354_v36 = vadd.f32 %v2353_v4, %v2352_v24  ;;  %v2284_v7 = vmul.f32 %v2022_v2, %v2022_v2  ;;  %v2159_v59 = vadd.f32 %v2158_v30, %v2157_v26  ;;  %v2160_v51 = vsel %vm2072_vm1, %v2020_v20, 0.0 }
 0x13f   :  { %v1112_v32 = vadd.f32 %v1111_v18, %v3443_v11  ;;  %v2357_v14 = vsel %vm2072_vm1, %v2282_v22, 0.0  ;;  %2088 = vst.msk [vmem:[#allocation5 + $0x78] sm:$0xff] %vm2072_vm1, %v2023_v16  ;;  %v2021_v8 = vadd.f32 %v3507_v34, %v1950_v63  ;;  %v1955_v1 = vadd.f32 %v2986_v28, %v1120_v45 }
 0x140   :  { %v2917_v49 = vpop.f32.mrf.mxu1  ;;  %v2987_v6 = vpop.f32.mrf.mxu0  ;;  %v2161_v38 = vadd.f32 %v2160_v51, %v2159_v59  ;;  %v2356_v9 = vadd.f32 %v2355_v57, %v2354_v36  ;;  %v2285_v0 = vmul.f32 %v2023_v16, %v2023_v16  ;;  %v2164_v43 = vsel %vm2072_vm1, %v2022_v2, 0.0 }
 0x141   :  { %v1953_v3 = vadd.f32 %v1746_v53, %v1112_v32  ;;  %v1123_v47 = vadd.f32 %v2917_v49, %v3447_v13  ;;  %2086 = vst.msk [vmem:[#allocation5 + $0x68] sm:$0xff] %vm2072_vm1, %v2021_v8  ;;  %v2162_v11 = vsel %vm2072_vm1, %v2021_v8, 0.0  ;;  %v2283_v61 = vmul.f32 %v2021_v8, %v2021_v8 }
 0x142   :  { %v2026_v55 = vadd.f32 %v3507_v34, %v1955_v1  ;;  %v1114_v40 = vpop.f32.mrf.mxu1  ;;  %v1749_v20 = vpop.f32.mrf.mxu0  ;;  %v2358_v10 = vadd.f32 %v2357_v14, %v2356_v9  ;;  %v2163_v41 = vadd.f32 %v2162_v11, %v2161_v38  ;;  %v2361_v12 = vsel %vm2072_vm1, %v2284_v7, 0.0 }
 0x143   :  { %v2024_v4 = vadd.f32 %v3507_v34, %v1953_v3  ;;  %v1956_v5 = vadd.f32 %v2987_v6, %v1123_v47  ;;  %v2359_v13 = vsel %vm2072_vm1, %v2283_v61, 0.0  ;;  %v1115_v28 = vadd.f32 %v1114_v40, %v3451_v15 }
 0x144   :  { %2091 = vst.msk [vmem:[#allocation5 + $0x90] sm:$0xff] %vm2072_vm1, %v2026_v55  ;;  %v2920_v30 = vpop.f32.mrf.mxu1  ;;  %v2990_v26 = vpop.f32.mrf.mxu0  ;;  %v2166_v24 = vsel %vm2072_vm1, %v2023_v16, 0.0  ;;  %v2165_v22 = vadd.f32 %v2164_v43, %v2163_v41  ;;  %v2360_v57 = vadd.f32 %v2359_v13, %v2358_v10  ;;  %v2363_v45 = vsel %vm2072_vm1, %v2285_v0, 0.0 }
 0x145   :  { %2089 = vst.msk [vmem:[#allocation5 + $0x80] sm:$0xff] %vm2072_vm1, %v2024_v4  ;;  %v2286_v63 = vmul.f32 %v2024_v4, %v2024_v4  ;;  %v2027_v2 = vadd.f32 %v3507_v34, %v1956_v5  ;;  %v1954_v18 = vadd.f32 %v1749_v20, %v1115_v28  ;;  %v1136_v53 = vadd.f32 %v2920_v30, %v3455_v17 }
 0x146   :  { %v1127_v36 = vpop.f32.mrf.mxu1  ;;  %v1762_v7 = vpop.f32.mrf.mxu0  ;;  %v2362_v59 = vadd.f32 %v2361_v12, %v2360_v57  ;;  %v2288_v15 = vmul.f32 %v2026_v55, %v2026_v55  ;;  %v2167_v32 = vadd.f32 %v2166_v24, %v2165_v22  ;;  %v2168_v16 = vsel %vm2072_vm1, %v2024_v4, 0.0 }
 0x147   :  { %v1128_v51 = vadd.f32 %v1127_v36, %v3459_v19  ;;  %v2365_v14 = vsel %vm2072_vm1, %v2286_v63, 0.0  ;;  %2092 = vst.msk [vmem:[#allocation5 + $0x98] sm:$0xff] %vm2072_vm1, %v2027_v2  ;;  %v2025_v8 = vadd.f32 %v3507_v34, %v1954_v18  ;;  %v1959_v1 = vadd.f32 %v2990_v26, %v1136_v53 }
 0x148   :  { %v2921_v49 = vpop.f32.mrf.mxu1  ;;  %v2991_v6 = vpop.f32.mrf.mxu0  ;;  %v2169_v38 = vadd.f32 %v2168_v16, %v2167_v32  ;;  %v2364_v17 = vadd.f32 %v2363_v45, %v2362_v59  ;;  %v2289_v47 = vmul.f32 %v2027_v2, %v2027_v2  ;;  %v2172_v5 = vsel %vm2072_vm1, %v2026_v55, 0.0 }
 0x149   :  { %v1957_v9 = vadd.f32 %v1762_v7, %v1128_v51  ;;  %v1139_v3 = vadd.f32 %v2921_v49, %v3463_v21  ;;  %2090 = vst.msk [vmem:[#allocation5 + $0x88] sm:$0xff] %vm2072_vm1, %v2025_v8  ;;  %v2170_v19 = vsel %vm2072_vm1, %v2025_v8, 0.0  ;;  %v2287_v0 = vmul.f32 %v2025_v8, %v2025_v8 }
 0x14a   :  { %v2030_v11 = vadd.f32 %v3507_v34, %v1959_v1  ;;  %v1130_v61 = vpop.f32.mrf.mxu1  ;;  %v1765_v40 = vpop.f32.mrf.mxu0  ;;  %v2366_v20 = vadd.f32 %v2365_v14, %v2364_v17  ;;  %v2171_v10 = vadd.f32 %v2170_v19, %v2169_v38  ;;  %v2369_v43 = vsel %vm2072_vm1, %v2288_v15, 0.0 }
 0x14b   :  { %v2028_v41 = vadd.f32 %v3507_v34, %v1957_v9  ;;  %v1960_v4 = vadd.f32 %v2991_v6, %v1139_v3  ;;  %v2367_v21 = vsel %vm2072_vm1, %v2287_v0, 0.0  ;;  %v1131_v12 = vadd.f32 %v1130_v61, %v3467_v23 }
 0x14c   :  { %2095 = vst.msk [vmem:[#allocation5 + $0xb0] sm:$0xff] %vm2072_vm1, %v2030_v11  ;;  %v2924_v13 = vpop.f32.mrf.mxu1  ;;  %v2994_v28 = vpop.f32.mrf.mxu0  ;;  %v2174_v30 = vsel %vm2072_vm1, %v2027_v2, 0.0  ;;  %v2173_v26 = vadd.f32 %v2172_v5, %v2171_v10  ;;  %v2368_v24 = vadd.f32 %v2367_v21, %v2366_v20  ;;  %v2371_v57 = vsel %vm2072_vm1, %v2289_v47, 0.0 }
 0x14d   :  { %2093 = vst.msk [vmem:[#allocation5 + $0xa0] sm:$0xff] %vm2072_vm1, %v2028_v41  ;;  %v2290_v22 = vmul.f32 %v2028_v41, %v2028_v41  ;;  %v2031_v55 = vadd.f32 %v3507_v34, %v1960_v4  ;;  %v1958_v63 = vadd.f32 %v1765_v40, %v1131_v12  ;;  %v1152_v45 = vadd.f32 %v2924_v13, %v3471_v25 }
 0x14e   :  { %v1143_v18 = vpop.f32.mrf.mxu1  ;;  %v1778_v53 = vpop.f32.mrf.mxu0  ;;  %v2370_v36 = vadd.f32 %v2369_v43, %v2368_v24  ;;  %v2292_v23 = vmul.f32 %v2030_v11, %v2030_v11  ;;  %v2175_v7 = vadd.f32 %v2174_v30, %v2173_v26  ;;  %v2176_v2 = vsel %vm2072_vm1, %v2028_v41, 0.0 }
 0x14f   :  { %v1144_v59 = vadd.f32 %v1143_v18, %v3475_v27  ;;  %v2373_v15 = vsel %vm2072_vm1, %v2290_v22, 0.0  ;;  %2096 = vst.msk [vmem:[#allocation5 + $0xb8] sm:$0xff] %vm2072_vm1, %v2031_v55  ;;  %v2029_v32 = vadd.f32 %v3507_v34, %v1958_v63  ;;  %v1963_v51 = vadd.f32 %v2994_v28, %v1152_v45 }
 0x150   :  { %v2925_v16 = vpop.f32.mrf.mxu1  ;;  %v2995_v14 = vpop.f32.mrf.mxu0  ;;  %v2177_v8 = vadd.f32 %v2176_v2, %v2175_v7  ;;  %v2372_v25 = vadd.f32 %v2371_v57, %v2370_v36  ;;  %v2293_v6 = vmul.f32 %v2031_v55, %v2031_v55  ;;  %v2180_v40 = vsel %vm2072_vm1, %v2030_v11, 0.0 }
 0x151   :  { %v1961_v1 = vadd.f32 %v1778_v53, %v1144_v59  ;;  %v1155_v49 = vadd.f32 %v2925_v16, %v3479_v29  ;;  %2094 = vst.msk [vmem:[#allocation5 + $0xa8] sm:$0xff] %vm2072_vm1, %v2029_v32  ;;  %v2178_v27 = vsel %vm2072_vm1, %v2029_v32, 0.0  ;;  %v2291_v38 = vmul.f32 %v2029_v32, %v2029_v32 }
 0x152   :  { %v2034_v17 = vadd.f32 %v3507_v34, %v1963_v51  ;;  %v1146_v9 = vpop.f32.mrf.mxu1  ;;  %v1781_v3 = vpop.f32.mrf.mxu0  ;;  %v2374_v47 = vadd.f32 %v2373_v15, %v2372_v25  ;;  %v2179_v19 = vadd.f32 %v2178_v27, %v2177_v8  ;;  %v2377_v20 = vsel %vm2072_vm1, %v2292_v23, 0.0 }
 0x153   :  { %v2032_v0 = vadd.f32 %v3507_v34, %v1961_v1  ;;  %v1964_v61 = vadd.f32 %v2995_v14, %v1155_v49  ;;  %v2375_v29 = vsel %vm2072_vm1, %v2291_v38, 0.0  ;;  %v1147_v10 = vadd.f32 %v1146_v9, %v3483_v31 }
 0x154   :  { %2099 = vst.msk [vmem:[#allocation5 + $0xd0] sm:$0xff] %vm2072_vm1, %v2034_v17  ;;  %v2928_v41 = vpop.f32.mrf.mxu1  ;;  %v2998_v4 = vpop.f32.mrf.mxu0  ;;  %v2182_v5 = vsel %vm2072_vm1, %v2031_v55, 0.0  ;;  %v2181_v43 = vadd.f32 %v2180_v40, %v2179_v19  ;;  %v2376_v21 = vadd.f32 %v2375_v29, %v2374_v47  ;;  %v2379_v13 = vsel %vm2072_vm1, %v2293_v6, 0.0 }
 0x155   :  { %2097 = vst.msk [vmem:[#allocation5 + $0xc0] sm:$0xff] %vm2072_vm1, %v2032_v0  ;;  %v2294_v12 = vmul.f32 %v2032_v0, %v2032_v0  ;;  %v2035_v11 = vadd.f32 %v3507_v34, %v1964_v61  ;;  %v1962_v28 = vadd.f32 %v1781_v3, %v1147_v10  ;;  %v1168_v30 = vadd.f32 %v2928_v41, %v3487_v33 }
 0x156   :  { %v1159_v26 = vpop.f32.mrf.mxu1  ;;  %v1794_v24 = vpop.f32.mrf.mxu0  ;;  %v2378_v22 = vadd.f32 %v2377_v20, %v2376_v21  ;;  %v2296_v31 = vmul.f32 %v2034_v17, %v2034_v17  ;;  %v2183_v57 = vadd.f32 %v2182_v5, %v2181_v43  ;;  %v2184_v55 = vsel %vm2072_vm1, %v2032_v0, 0.0 }
 0x157   :  { %v1160_v63 = vadd.f32 %v1159_v26, %v3491_v35  ;;  %v2381_v45 = vsel %vm2072_vm1, %v2294_v12, 0.0  ;;  %2100 = vst.msk [vmem:[#allocation5 + $0xd8] sm:$0xff] %vm2072_vm1, %v2035_v11  ;;  %v2033_v18 = vadd.f32 %v3507_v34, %v1962_v28  ;;  %v1967_v53 = vadd.f32 %v2998_v4, %v1168_v30 }
 0x158   :  { %v2929_v36 = vpop.f32.mrf.mxu1  ;;  %v2999_v23 = vpop.f32.mrf.mxu0  ;;  %v2185_v7 = vadd.f32 %v2184_v55, %v2183_v57  ;;  %v2380_v33 = vadd.f32 %v2379_v13, %v2378_v22  ;;  %v2297_v15 = vmul.f32 %v2035_v11, %v2035_v11  ;;  %v2188_v6 = vsel %vm2072_vm1, %v2034_v17, 0.0 }
 0x159   :  { %v1965_v59 = vadd.f32 %v1794_v24, %v1160_v63  ;;  %v1171_v2 = vadd.f32 %v2929_v36, %v3495_v37  ;;  %2098 = vst.msk [vmem:[#allocation5 + $0xc8] sm:$0xff] %vm2072_vm1, %v2033_v18  ;;  %v2186_v35 = vsel %vm2072_vm1, %v2033_v18, 0.0  ;;  %v2295_v32 = vmul.f32 %v2033_v18, %v2033_v18 }
 0x15a   :  { %v2038_v51 = vadd.f32 %v3507_v34, %v1967_v53  ;;  %v1162_v16 = vpop.f32.mrf.mxu1  ;;  %v1797_v14 = vpop.f32.mrf.mxu0  ;;  %v2382_v8 = vadd.f32 %v2381_v45, %v2380_v33  ;;  %v2187_v25 = vadd.f32 %v2186_v35, %v2185_v7  ;;  %v2385_v27 = vsel %vm2072_vm1, %v2296_v31, 0.0 }
 0x15b   :  { %v2036_v1 = vadd.f32 %v3507_v34, %v1965_v59  ;;  %v1968_v49 = vadd.f32 %v2999_v23, %v1171_v2  ;;  %v2383_v37 = vsel %vm2072_vm1, %v2295_v32, 0.0  ;;  %v1163_v38 = vadd.f32 %v1162_v16, %v3499_v39 }
 0x15c   :  { %2103 = vst.msk [vmem:[#allocation5 + $0xf0] sm:$0xff] %vm2072_vm1, %v2038_v51  ;;  %v2932_v9 = vpop.f32.mrf.mxu1  ;;  %v3002_v3 = vpop.f32.mrf.mxu0  ;;  %v2190_v47 = vsel %vm2072_vm1, %v2035_v11, 0.0  ;;  %v2189_v19 = vadd.f32 %v2188_v6, %v2187_v25  ;;  %v2384_v0 = vadd.f32 %v2383_v37, %v2382_v8  ;;  %v2387_v40 = vsel %vm2072_vm1, %v2297_v15, 0.0 }
 0x15d   :  { %2101 = vst.msk [vmem:[#allocation5 + $0xe0] sm:$0xff] %vm2072_vm1, %v2036_v1  ;;  %v2298_v61 = vmul.f32 %v2036_v1, %v2036_v1  ;;  %v2039_v17 = vadd.f32 %v3507_v34, %v1968_v49  ;;  %v1966_v20 = vadd.f32 %v1797_v14, %v1163_v38  ;;  %v1184_v29 = vadd.f32 %v2932_v9, %v3377_v42 }
 0x15e   :  { %v1175_v10 = vpop.f32.mrf.mxu1  ;;  %v1810_v41 = vpop.f32.mrf.mxu0  ;;  %v2386_v4 = vadd.f32 %v2385_v27, %v2384_v0  ;;  %v2300_v39 = vmul.f32 %v2038_v51, %v2038_v51  ;;  %v2191_v5 = vadd.f32 %v2190_v47, %v2189_v19  ;;  %v2192_v21 = vsel %vm2072_vm1, %v2036_v1, 0.0 }
 0x15f   :  { %v1176_v43 = vadd.f32 %v1175_v10, %v3381_v44  ;;  %v2389_v12 = vsel %vm2072_vm1, %v2298_v61, 0.0  ;;  %2104 = vst.msk [vmem:[#allocation5 + $0xf8] sm:$0xff] %vm2072_vm1, %v2039_v17  ;;  %v2037_v13 = vadd.f32 %v3507_v34, %v1966_v20  ;;  %v1971_v11 = vadd.f32 %v3002_v3, %v1184_v29 }
 0x160   :  { %v2933_v28 = vpop.f32.mrf.mxu1  ;;  %v3003_v30 = vpop.f32.mrf.mxu0  ;;  %v2193_v26 = vadd.f32 %v2192_v21, %v2191_v5  ;;  %v2388_v42 = vadd.f32 %v2387_v40, %v2386_v4  ;;  %v2301_v31 = vmul.f32 %v2039_v17, %v2039_v17  ;;  %v2196_v7 = vsel %vm2072_vm1, %v2038_v51, 0.0 }
 0x161   :  { %v1969_v24 = vadd.f32 %v1810_v41, %v1176_v43  ;;  %v1187_v22 = vadd.f32 %v2933_v28, %v3385_v46  ;;  %2102 = vst.msk [vmem:[#allocation5 + $0xe8] sm:$0xff] %vm2072_vm1, %v2037_v13  ;;  %v2194_v44 = vsel %vm2072_vm1, %v2037_v13, 0.0  ;;  %v2299_v57 = vmul.f32 %v2037_v13, %v2037_v13 }
 0x162   :  { %v2042_v63 = vadd.f32 %v3507_v34, %v1971_v11  ;;  %v1178_v55 = vpop.f32.mrf.mxu1  ;;  %v1813_v45 = vpop.f32.mrf.mxu0  ;;  %v2390_v18 = vadd.f32 %v2389_v12, %v2388_v42  ;;  %v2195_v53 = vadd.f32 %v2194_v44, %v2193_v26  ;;  %v2393_v33 = vsel %vm2072_vm1, %v2300_v39, 0.0 }
 0x163   :  { %v2040_v36 = vadd.f32 %v3507_v34, %v1969_v24  ;;  %v1972_v23 = vadd.f32 %v3003_v30, %v1187_v22  ;;  %v2391_v46 = vsel %vm2072_vm1, %v2299_v57, 0.0  ;;  %v1179_v59 = vadd.f32 %v1178_v55, %v3389_v48 }
 0x164   :  { %2107 = vst.msk [vmem:[#allocation5 + $0x110] sm:$0xff] %vm2072_vm1, %v2042_v63  ;;  %v2936_v2 = vpop.f32.mrf.mxu1  ;;  %v3006_v15 = vpop.f32.mrf.mxu0  ;;  %v2198_v35 = vsel %vm2072_vm1, %v2039_v17, 0.0  ;;  %v2197_v32 = vadd.f32 %v2196_v7, %v2195_v53  ;;  %v2392_v16 = vadd.f32 %v2391_v46, %v2390_v18  ;;  %v2395_v8 = vsel %vm2072_vm1, %v2301_v31, 0.0 }
 0x165   :  { %2105 = vst.msk [vmem:[#allocation5 + $0x100] sm:$0xff] %vm2072_vm1, %v2040_v36  ;;  %v2302_v14 = vmul.f32 %v2040_v36, %v2040_v36  ;;  %v2043_v51 = vadd.f32 %v3507_v34, %v1972_v23  ;;  %v1970_v25 = vadd.f32 %v1813_v45, %v1179_v59  ;;  %v1200_v1 = vadd.f32 %v2936_v2, %v3393_v50 }
 0x166   :  { %v1191_v49 = vpop.f32.mrf.mxu1  ;;  %v1826_v6 = vpop.f32.mrf.mxu0  ;;  %v2394_v27 = vadd.f32 %v2393_v33, %v2392_v16  ;;  %v2304_v48 = vmul.f32 %v2042_v63, %v2042_v63  ;;  %v2199_v37 = vadd.f32 %v2198_v35, %v2197_v32  ;;  %v2200_v9 = vsel %vm2072_vm1, %v2040_v36, 0.0 }
 0x167   :  { %v1192_v38 = vadd.f32 %v1191_v49, %v3397_v52  ;;  %v2397_v3 = vsel %vm2072_vm1, %v2302_v14, 0.0  ;;  %2108 = vst.msk [vmem:[#allocation5 + $0x118] sm:$0xff] %vm2072_vm1, %v2043_v51  ;;  %v2041_v47 = vadd.f32 %v3507_v34, %v1970_v25  ;;  %v1975_v19 = vadd.f32 %v3006_v15, %v1200_v1 }
 0x168   :  { %v2937_v0 = vpop.f32.mrf.mxu1  ;;  %v3007_v61 = vpop.f32.mrf.mxu0  ;;  %v2201_v40 = vadd.f32 %v2200_v9, %v2199_v37  ;;  %v2396_v50 = vadd.f32 %v2395_v8, %v2394_v27  ;;  %v2305_v29 = vmul.f32 %v2043_v51, %v2043_v51  ;;  %v2204_v13 = vsel %vm2072_vm1, %v2042_v63, 0.0  ;;  %v3866_v9 = vld [vmem:[#allocation11_spill] sm:$0xff] }
 0x169   :  { %v1973_v17 = vadd.f32 %v1826_v6, %v1192_v38  ;;  %v1203_v20 = vadd.f32 %v2937_v0, %v3401_v54  ;;  %2106 = vst.msk [vmem:[#allocation5 + $0x108] sm:$0xff] %vm2072_vm1, %v2041_v47  ;;  %v2202_v52 = vsel %vm2072_vm1, %v2041_v47, 0.0  ;;  %v2303_v10 = vmul.f32 %v2041_v47, %v2041_v47 }
 0x16a   :  { %v2046_v41 = vadd.f32 %v3507_v34, %v1975_v19  ;;  %v1194_v4 = vpop.f32.mrf.mxu1  ;;  %v1829_v39 = vpop.f32.mrf.mxu0  ;;  %v2398_v5 = vadd.f32 %v2397_v3, %v2396_v50  ;;  %v2203_v43 = vadd.f32 %v2202_v52, %v2201_v40  ;;  %v2401_v11 = vsel %vm2072_vm1, %v2304_v48, 0.0  ;;  %v3867_v52 = vld [vmem:[#allocation12_spill] sm:$0xff] }
 0x16b   :  { %v2044_v21 = vadd.f32 %v3507_v34, %v1973_v17  ;;  %v1976_v12 = vadd.f32 %v3007_v61, %v1203_v20  ;;  %v2399_v54 = vsel %vm2072_vm1, %v2303_v10, 0.0  ;;  %v1195_v28 = vadd.f32 %v1194_v4, %v3405_v56 }
 0x16c   :  { %2111 = vst.msk [vmem:[#allocation5 + $0x130] sm:$0xff] %vm2072_vm1, %v2046_v41  ;;  %v2940_v30 = vpop.f32.mrf.mxu1  ;;  %v3010_v26 = vpop.f32.mrf.mxu0  ;;  %v2206_v42 = vsel %vm2072_vm1, %v2043_v51, 0.0  ;;  %v2205_v24 = vadd.f32 %v2204_v13, %v2203_v43  ;;  %v2400_v22 = vadd.f32 %v2399_v54, %v2398_v5  ;;  %v2403_v44 = vsel %vm2072_vm1, %v2305_v29, 0.0 }
 0x16d   :  { %2109 = vst.msk [vmem:[#allocation5 + $0x120] sm:$0xff] %vm2072_vm1, %v2044_v21  ;;  %v2306_v31 = vmul.f32 %v2044_v21, %v2044_v21  ;;  %v2047_v57 = vadd.f32 %v3507_v34, %v1976_v12  ;;  %v1974_v63 = vadd.f32 %v1829_v39, %v1195_v28  ;;  %v1216_v55 = vadd.f32 %v2940_v30, %v3409_v58 }
 0x16e   :  { %v1207_v45 = vpop.f32.mrf.mxu1  ;;  %v1842_v18 = vpop.f32.mrf.mxu0  ;;  %v2402_v53 = vadd.f32 %v2401_v11, %v2400_v22  ;;  %v2308_v56 = vmul.f32 %v2046_v41, %v2046_v41  ;;  %v2207_v36 = vadd.f32 %v2206_v42, %v2205_v24  ;;  %v2208_v7 = vsel %vm2072_vm1, %v2044_v21, 0.0  ;;  %v3868_v21 = vld [vmem:[#allocation13_spill] sm:$0xff] }
 0x16f   :  { %v1208_v23 = vadd.f32 %v1207_v45, %v3413_v60  ;;  %v2405_v33 = vsel %vm2072_vm1, %v2306_v31, 0.0  ;;  %2112 = vst.msk [vmem:[#allocation5 + $0x138] sm:$0xff] %vm2072_vm1, %v2047_v57  ;;  %v2045_v46 = vadd.f32 %v3507_v34, %v1974_v63  ;;  %v1979_v59 = vadd.f32 %v3010_v26, %v1216_v55  ;;  %v3869_v31 = vld [vmem:[#allocation14_spill] sm:$0xff] }
 0x170   :  { %v2941_v2 = vpop.f32.mrf.mxu1  ;;  %v3011_v15 = vpop.f32.mrf.mxu0  ;;  %v2209_v35 = vadd.f32 %v2208_v7, %v2207_v36  ;;  %v2404_v58 = vadd.f32 %v2403_v44, %v2402_v53  ;;  %v2309_v14 = vmul.f32 %v2047_v57, %v2047_v57  ;;  %v2212_v37 = vsel %vm2072_vm1, %v2046_v41, 0.0 }
 0x171   :  { %v1977_v32 = vadd.f32 %v1842_v18, %v1208_v23  ;;  %v1219_v16 = vadd.f32 %v2941_v2, %v3417_v62  ;;  %2110 = vst.msk [vmem:[#allocation5 + $0x128] sm:$0xff] %vm2072_vm1, %v2045_v46  ;;  %v2210_v60 = vsel %vm2072_vm1, %v2045_v46, 0.0  ;;  %v2307_v8 = vmul.f32 %v2045_v46, %v2045_v46  ;;  %v3870_v2 = vld [vmem:[#allocation15_spill] sm:$0xff] }
 0x172   :  { %v2050_v51 = vadd.f32 %v3507_v34, %v1979_v59  ;;  %v1210_v25 = vpop.f32.mrf.mxu1  ;;  %v1845_v1 = vpop.f32.mrf.mxu0  ;;  %v2406_v49 = vadd.f32 %v2405_v33, %v2404_v58  ;;  %v2211_v6 = vadd.f32 %v2210_v60, %v2209_v35  ;;  %v2409_v38 = vsel %vm2072_vm1, %v2308_v56, 0.0 }
 0x173   :  { %v2048_v27 = vadd.f32 %v3507_v34, %v1977_v32  ;;  %v1980_v48 = vadd.f32 %v3011_v15, %v1219_v16  ;;  %v2407_v62 = vsel %vm2072_vm1, %v2307_v8, 0.0  ;;  %v1211_v3 = vadd.f32 %v1210_v25, %v3866_v9 }
 0x174   :  { %2115 = vst.msk [vmem:[#allocation5 + $0x150] sm:$0xff] %vm2072_vm1, %v2050_v51  ;;  %v2944_v47 = vpop.f32.mrf.mxu1  ;;  %v3014_v19 = vpop.f32.mrf.mxu0  ;;  %v2214_v0 = vsel %vm2072_vm1, %v2047_v57, 0.0  ;;  %v2213_v61 = vadd.f32 %v2212_v37, %v2211_v6  ;;  %v2408_v40 = vadd.f32 %v2407_v62, %v2406_v49  ;;  %v2411_v17 = vsel %vm2072_vm1, %v2309_v14, 0.0  ;;  %v3872_v62 = vld [vmem:[#allocation17_spill] sm:$0xff] }
 0x175   :  { %2113 = vst.msk [vmem:[#allocation5 + $0x140] sm:$0xff] %vm2072_vm1, %v2048_v27  ;;  %v2310_v50 = vmul.f32 %v2048_v27, %v2048_v27  ;;  %v2051_v20 = vadd.f32 %v3507_v34, %v1980_v48  ;;  %v1978_v29 = vadd.f32 %v1845_v1, %v1211_v3  ;;  %v1232_v10 = vadd.f32 %v2944_v47, %v3867_v52  ;;  %v3871_v1 = vld [vmem:[#allocation16_spill] sm:$0xff] }
 0x176   :  { %v1223_v41 = vpop.f32.mrf.mxu1  ;;  %v1858_v4 = vpop.f32.mrf.mxu0  ;;  %v2410_v39 = vadd.f32 %v2409_v38, %v2408_v40  ;;  %v2312_v5 = vmul.f32 %v2050_v51, %v2050_v51  ;;  %v2215_v43 = vadd.f32 %v2214_v0, %v2213_v61  ;;  %v2216_v13 = vsel %vm2072_vm1, %v2048_v27, 0.0 }
 0x177   :  { %v1224_v12 = vadd.f32 %v1223_v41, %v3868_v21  ;;  %v2413_v11 = vsel %vm2072_vm1, %v2310_v50, 0.0  ;;  %2116 = vst.msk [vmem:[#allocation5 + $0x158] sm:$0xff] %vm2072_vm1, %v2051_v20  ;;  %v2049_v54 = vadd.f32 %v3507_v34, %v1978_v29  ;;  %v1983_v28 = vadd.f32 %v3014_v19, %v1232_v10  ;;  %v3873_v29 = vld [vmem:[#allocation18_spill] sm:$0xff] }
 0x178   :  { %v2945_v30 = vpop.f32.mrf.mxu1  ;;  %v3015_v26 = vpop.f32.mrf.mxu0  ;;  %v2217_v42 = vadd.f32 %v2216_v13, %v2215_v43  ;;  %v2412_v24 = vadd.f32 %v2411_v17, %v2410_v39  ;;  %v2313_v57 = vmul.f32 %v2051_v20, %v2051_v20  ;;  %v2220_v33 = vsel %vm2072_vm1, %v2050_v51, 0.0 }
 0x179   :  { %v1981_v22 = vadd.f32 %v1858_v4, %v1224_v12  ;;  %v1235_v44 = vadd.f32 %v2945_v30, %v3869_v31  ;;  %2114 = vst.msk [vmem:[#allocation5 + $0x148] sm:$0xff] %vm2072_vm1, %v2049_v54  ;;  %v2218_v63 = vsel %vm2072_vm1, %v2049_v54, 0.0  ;;  %v2311_v55 = vmul.f32 %v2049_v54, %v2049_v54 }
 0x17a   :  { %v2054_v45 = vadd.f32 %v3507_v34, %v1983_v28  ;;  %v1226_v18 = vpop.f32.mrf.mxu1  ;;  %v1861_v53 = vpop.f32.mrf.mxu0  ;;  %v2414_v56 = vadd.f32 %v2413_v11, %v2412_v24  ;;  %v2219_v36 = vadd.f32 %v2218_v63, %v2217_v42  ;;  %v2417_v46 = vsel %vm2072_vm1, %v2312_v5, 0.0 }
 0x17b   :  { %v2052_v23 = vadd.f32 %v3507_v34, %v1981_v22  ;;  %v1984_v7 = vadd.f32 %v3015_v26, %v1235_v44  ;;  %v2415_v59 = vsel %vm2072_vm1, %v2311_v55, 0.0  ;;  %v1227_v15 = vadd.f32 %v1226_v18, %v3870_v2  ;;  %v3874_v26 = vld [vmem:[#allocation19_spill] sm:$0xff] }
 0x17c   :  { %2119 = vst.msk [vmem:[#allocation5 + $0x170] sm:$0xff] %vm2072_vm1, %v2054_v45  ;;  %v2948_v35 = vpop.f32.mrf.mxu1  ;;  %v3018_v58 = vpop.f32.mrf.mxu0  ;;  %v2222_v32 = vsel %vm2072_vm1, %v2051_v20, 0.0  ;;  %v2221_v16 = vadd.f32 %v2220_v33, %v2219_v36  ;;  %v2416_v14 = vadd.f32 %v2415_v59, %v2414_v56  ;;  %v2419_v8 = vsel %vm2072_vm1, %v2313_v57, 0.0  ;;  %v3876_v59 = vld [vmem:[#allocation21_spill] sm:$0xff] }
 0x17d   :  { %2117 = vst.msk [vmem:[#allocation5 + $0x160] sm:$0xff] %vm2072_vm1, %v2052_v23  ;;  %v2314_v60 = vmul.f32 %v2052_v23, %v2052_v23  ;;  %v2055_v51 = vadd.f32 %v3507_v34, %v1984_v7  ;;  %v1982_v25 = vadd.f32 %v1861_v53, %v1227_v15  ;;  %v1248_v49 = vadd.f32 %v2948_v35, %v3871_v1  ;;  %v3745_v34 = vld [vmem:[%s3842_s2] ss:$0 sm:$0xff]  ;;  %v3875_v53 = vld [vmem:[#allocation20_spill] sm:$0xff]  ;;  %s3220_s2 = smov [#allocation5]  }
 0x17e   :  { %v1239_v6 = vpop.f32.mrf.mxu1  ;;  %v1874_v27 = vpop.f32.mrf.mxu0  ;;  %v2418_v48 = vadd.f32 %v2417_v46, %v2416_v14  ;;  %v2316_v37 = vmul.f32 %v2054_v45, %v2054_v45  ;;  %v2223_v38 = vadd.f32 %v2222_v32, %v2221_v16  ;;  %v2224_v3 = vsel %vm2072_vm1, %v2052_v23, 0.0  ;;  %s2477_s16 = sshll.u32 %s3220_s2, 4  ;;  %s2478_s16 = int_to_ptr.vmem [resolvable:$true] %s2477_s16 }
 0x17f   :  { %v1240_v9 = vadd.f32 %v1239_v6, %v3872_v62  ;;  %v2421_v47 = vsel %vm2072_vm1, %v2314_v60, 0.0  ;;  %2120 = vst.msk [vmem:[#allocation5 + $0x178] sm:$0xff] %vm2072_vm1, %v2055_v51  ;;  %v2053_v19 = vadd.f32 %v3745_v34, %v1982_v25  ;;  %v1987_v0 = vadd.f32 %v3018_v58, %v1248_v49  ;;  %v3877_v25 = vld [vmem:[#allocation22_spill] sm:$0xff]  ;;  %s3171_s17 = scalar_lea.vmem %s2478_s16, 8192  ;;  %p3176_p6 = scmp.lt.s32.totalorder %s2478_s16, %s2478_s16 }
 0x180   :  { %v2949_v61 = vpop.f32.mrf.mxu1  ;;  %v3019_v40 = vpop.f32.mrf.mxu0  ;;  %v2225_v50 = vadd.f32 %v2224_v3, %v2223_v38  ;;  %v2420_v17 = vadd.f32 %v2419_v8, %v2418_v48  ;;  %v2317_v10 = vmul.f32 %v2055_v51, %v2055_v51  ;;  %v2228_v54 = vsel %vm2072_vm1, %v2054_v45, 0.0  ;;  %p3172_p5 = scmp.ne.s32.totalorder %s2478_s16, %s3171_s17  ;;  %p3177_p7 = scmp.lt.s32.totalorder %s3171_s17, %s3171_s17 }
 0x181   :  { %v1985_v20 = vadd.f32 %v1874_v27, %v1240_v9  ;;  %v1251_v52 = vadd.f32 %v2949_v61, %v3873_v29  ;;  %2118 = vst.msk [vmem:[#allocation5 + $0x168] sm:$0xff] %vm2072_vm1, %v2053_v19  ;;  %v2226_v41 = vsel %vm2072_vm1, %v2053_v19, 0.0  ;;  %v2315_v4 = vmul.f32 %v2053_v19, %v2053_v19 }
 0x182   :  { %v2058_v39 = vadd.f32 %v3745_v34, %v1987_v0  ;;  %v1242_v5 = vpop.f32.mrf.mxu1  ;;  %v1877_v43 = vpop.f32.mrf.mxu0  ;;  %v2422_v21 = vadd.f32 %v2421_v47, %v2420_v17  ;;  %v2227_v12 = vadd.f32 %v2226_v41, %v2225_v50  ;;  %v2425_v28 = vsel %vm2072_vm1, %v2316_v37, 0.0  ;;  %p3178_p8 = por %p3177_p7, %p3176_p6 }
 0x183   :  { %v2056_v13 = vadd.f32 %v3745_v34, %v1985_v20  ;;  %v1988_v11 = vadd.f32 %v3019_v40, %v1251_v52  ;;  %v2423_v30 = vsel %vm2072_vm1, %v2315_v4, 0.0  ;;  %v1243_v42 = vadd.f32 %v1242_v5, %v3874_v26  ;;  %v3878_v40 = vld [vmem:[#allocation23_spill] sm:$0xff] }
 0x184   :  { %2123 = vst.msk [vmem:[#allocation5 + $0x190] sm:$0xff] %vm2072_vm1, %v2058_v39  ;;  %v2952_v24 = vpop.f32.mrf.mxu1  ;;  %v3022_v22 = vpop.f32.mrf.mxu0  ;;  %v2230_v31 = vsel %vm2072_vm1, %v2055_v51, 0.0  ;;  %v2229_v44 = vadd.f32 %v2228_v54, %v2227_v12  ;;  %v2424_v57 = vadd.f32 %v2423_v30, %v2422_v21  ;;  %v2427_v55 = vsel %vm2072_vm1, %v2317_v10, 0.0  ;;  %v3880_v30 = vld [vmem:[#allocation25_spill] sm:$0xff]  ;;  %p3179_p9 = pnand %p3178_p8, %p3172_p5 }
 0x185   :  { %2121 = vst.msk [vmem:[#allocation5 + $0x180] sm:$0xff] %vm2072_vm1, %v2056_v13  ;;  %v2318_v63 = vmul.f32 %v2056_v13, %v2056_v13  ;;  %v2059_v45 = vadd.f32 %v3745_v34, %v1988_v11  ;;  %v1986_v18 = vadd.f32 %v1877_v43, %v1243_v42  ;;  %v1264_v56 = vadd.f32 %v2952_v24, %v3875_v53  ;;  %v3879_v43 = vld [vmem:[#allocation24_spill] sm:$0xff] }
 0x186   :  { %v1255_v36 = vpop.f32.mrf.mxu1  ;;  %v1890_v23 = vpop.f32.mrf.mxu0  ;;  %v2426_v7 = vadd.f32 %v2425_v28, %v2424_v57  ;;  %v2320_v33 = vmul.f32 %v2058_v39, %v2058_v39  ;;  %v2231_v46 = vadd.f32 %v2230_v31, %v2229_v44  ;;  %v2232_v15 = vsel %vm2072_vm1, %v2056_v13, 0.0 }
 0x187   :  { %v1256_v2 = vadd.f32 %v1255_v36, %v3876_v59  ;;  %v2429_v35 = vsel %vm2072_vm1, %v2318_v63, 0.0  ;;  %2124 = vst.msk [vmem:[#allocation5 + $0x198] sm:$0xff] %vm2072_vm1, %v2059_v45  ;;  %v2057_v58 = vadd.f32 %v3745_v34, %v1986_v18  ;;  %v1991_v32 = vadd.f32 %v3022_v22, %v1264_v56  ;;  %v3881_v18 = vld [vmem:[#allocation26_spill] sm:$0xff] }
 0x188   :  { %v2953_v16 = vpop.f32.mrf.mxu1  ;;  %v3023_v14 = vpop.f32.mrf.mxu0  ;;  %v2233_v60 = vadd.f32 %v2232_v15, %v2231_v46  ;;  %v2428_v8 = vadd.f32 %v2427_v55, %v2426_v7  ;;  %v2321_v49 = vmul.f32 %v2059_v45, %v2059_v45  ;;  %v2236_v19 = vsel %vm2072_vm1, %v2058_v39, 0.0 }
 0x189   :  { %v1989_v51 = vadd.f32 %v1890_v23, %v1256_v2  ;;  %v1267_v1 = vadd.f32 %v2953_v16, %v3877_v25  ;;  %2122 = vst.msk [vmem:[#allocation5 + $0x188] sm:$0xff] %vm2072_vm1, %v2057_v58  ;;  %v2234_v6 = vsel %vm2072_vm1, %v2057_v58, 0.0  ;;  %v2319_v27 = vmul.f32 %v2057_v58, %v2057_v58  ;;  %v3882_v16 = vld [vmem:[#allocation27_spill] sm:$0xff] }
 0x18a   :  { %v2062_v48 = vadd.f32 %v3745_v34, %v1991_v32  ;;  %v1258_v37 = vpop.f32.mrf.mxu1  ;;  %v1893_v38 = vpop.f32.mrf.mxu0  ;;  %v2430_v62 = vadd.f32 %v2429_v35, %v2428_v8  ;;  %v2235_v9 = vadd.f32 %v2234_v6, %v2233_v60  ;;  %v2433_v0 = vsel %vm2072_vm1, %v2320_v33, 0.0 }
 0x18b   :  { %v2060_v3 = vadd.f32 %v3745_v34, %v1989_v51  ;;  %v1992_v47 = vadd.f32 %v3023_v14, %v1267_v1  ;;  %v2431_v61 = vsel %vm2072_vm1, %v2319_v27, 0.0  ;;  %v1259_v50 = vadd.f32 %v1258_v37, %v3878_v40  ;;  %v3883_v37 = vld [vmem:[#allocation28_spill] sm:$0xff] }
 0x18c   :  { %2127 = vst.msk [vmem:[#allocation5 + $0x1b0] sm:$0xff] %vm2072_vm1, %v2062_v48  ;;  %v2956_v17 = vpop.f32.mrf.mxu1  ;;  %v3026_v20 = vpop.f32.mrf.mxu0  ;;  %v2238_v29 = vsel %vm2072_vm1, %v2059_v45, 0.0  ;;  %v2237_v52 = vadd.f32 %v2236_v19, %v2235_v9  ;;  %v2432_v10 = vadd.f32 %v2431_v61, %v2430_v62  ;;  %v2435_v4 = vsel %vm2072_vm1, %v2321_v49, 0.0 }
 0x18d   :  { %2125 = vst.msk [vmem:[#allocation5 + $0x1a0] sm:$0xff] %vm2072_vm1, %v2060_v3  ;;  %v2322_v41 = vmul.f32 %v2060_v3, %v2060_v3  ;;  %v2063_v39 = vadd.f32 %v3745_v34, %v1992_v47  ;;  %v1990_v5 = vadd.f32 %v1893_v38, %v1259_v50  ;;  %v1280_v21 = vadd.f32 %v2956_v17, %v3879_v43 }
 0x18e   :  { %v1271_v12 = vpop.f32.mrf.mxu1  ;;  %v1906_v13 = vpop.f32.mrf.mxu0  ;;  %v2434_v11 = vadd.f32 %v2433_v0, %v2432_v10  ;;  %v2324_v54 = vmul.f32 %v2062_v48, %v2062_v48  ;;  %v2239_v28 = vadd.f32 %v2238_v29, %v2237_v52  ;;  %v2240_v42 = vsel %vm2072_vm1, %v2060_v3, 0.0  ;;  %v3884_v0 = vld [vmem:[#allocation29_spill] sm:$0xff] }
 0x18f   :  { %v1272_v26 = vadd.f32 %v1271_v12, %v3880_v30  ;;  %v2437_v24 = vsel %vm2072_vm1, %v2322_v41, 0.0  ;;  %2128 = vst.msk [vmem:[#allocation5 + $0x1b8] sm:$0xff] %vm2072_vm1, %v2063_v39  ;;  %v2061_v22 = vadd.f32 %v3745_v34, %v1990_v5  ;;  %v1995_v31 = vadd.f32 %v3026_v20, %v1280_v21 }
 0x190   :  { %v2957_v44 = vpop.f32.mrf.mxu1  ;;  %v3027_v57 = vpop.f32.mrf.mxu0  ;;  %v2241_v63 = vadd.f32 %v2240_v42, %v2239_v28  ;;  %v2436_v55 = vadd.f32 %v2435_v4, %v2434_v11  ;;  %v2325_v56 = vmul.f32 %v2063_v39, %v2063_v39  ;;  %v2244_v58 = vsel %vm2072_vm1, %v2062_v48, 0.0  ;;  %v3885_v4 = vld [vmem:[#allocation30_spill] sm:$0xff] }
 0x191   :  { %v1993_v45 = vadd.f32 %v1906_v13, %v1272_v26  ;;  %v1283_v53 = vadd.f32 %v2957_v44, %v3881_v18  ;;  %2126 = vst.msk [vmem:[#allocation5 + $0x1a8] sm:$0xff] %vm2072_vm1, %v2061_v22  ;;  %v2242_v36 = vsel %vm2072_vm1, %v2061_v22, 0.0  ;;  %v2323_v23 = vmul.f32 %v2061_v22, %v2061_v22 }
 0x192   :  { %v2066_v7 = vadd.f32 %v3745_v34, %v1995_v31  ;;  %v1274_v33 = vpop.f32.mrf.mxu1  ;;  %v1909_v46 = vpop.f32.mrf.mxu0  ;;  %v2438_v59 = vadd.f32 %v2437_v24, %v2436_v55  ;;  %v2243_v2 = vadd.f32 %v2242_v36, %v2241_v63  ;;  %v2441_v51 = vsel %vm2072_vm1, %v2324_v54, 0.0  ;;  %v3886_v31 = vld [vmem:[#allocation31_spill] sm:$0xff] }
 0x193   :  { %v2064_v15 = vadd.f32 %v3745_v34, %v1993_v45  ;;  %v1996_v35 = vadd.f32 %v3027_v57, %v1283_v53  ;;  %v2439_v32 = vsel %vm2072_vm1, %v2323_v23, 0.0  ;;  %v1275_v14 = vadd.f32 %v1274_v33, %v3882_v16 }
 0x194   :  { %2131 = vst.msk [vmem:[#allocation5 + $0x1d0] sm:$0xff] %vm2072_vm1, %v2066_v7  ;;  %v2960_v60 = vpop.f32.mrf.mxu1  ;;  %v3030_v8 = vpop.f32.mrf.mxu0  ;;  %v2246_v25 = vsel %vm2072_vm1, %v2063_v39, 0.0  ;;  %v2245_v1 = vadd.f32 %v2244_v58, %v2243_v2  ;;  %v2440_v49 = vadd.f32 %v2439_v32, %v2438_v59  ;;  %v2443_v3 = vsel %vm2072_vm1, %v2325_v56, 0.0 }
 0x195   :  { %2129 = vst.msk [vmem:[#allocation5 + $0x1c0] sm:$0xff] %vm2072_vm1, %v2064_v15  ;;  %v2326_v6 = vmul.f32 %v2064_v15, %v2064_v15  ;;  %v2067_v27 = vadd.f32 %v3745_v34, %v1996_v35  ;;  %v1994_v48 = vadd.f32 %v1909_v46, %v1275_v14  ;;  %v1296_v38 = vadd.f32 %v2960_v60, %v3883_v37 }
 0x196   :  { %v1287_v62 = vpop.f32.mrf.mxu1  ;;  %v1922_v9 = vpop.f32.mrf.mxu0  ;;  %v2442_v47 = vadd.f32 %v2441_v51, %v2440_v49  ;;  %v2247_v19 = vadd.f32 %v2246_v25, %v2245_v1  ;;  %v2328_v40 = vmul.f32 %v2066_v7, %v2066_v7  ;;  %v2248_v50 = vsel %vm2072_vm1, %v2064_v15, 0.0 }
 0x197   :  { %v1288_v61 = vadd.f32 %v1287_v62, %v3884_v0  ;;  %2132 = vst.msk [vmem:[#allocation5 + $0x1d8] sm:$0xff] %vm2072_vm1, %v2067_v27  ;;  %v2065_v17 = vadd.f32 %v3745_v34, %v1994_v48  ;;  %v1999_v20 = vadd.f32 %v3030_v8, %v1296_v38  ;;  %v2445_v43 = vsel %vm2072_vm1, %v2326_v6, 0.0 }
 0x198   :  { %v2961_v29 = vpop.f32.mrf.mxu1  ;;  %v2249_v52 = vadd.f32 %v2248_v50, %v2247_v19  ;;  %v2444_v10 = vadd.f32 %v2443_v3, %v2442_v47  ;;  %v3031_v5 = vpop.f32.mrf.mxu0  ;;  %v2252_v42 = vsel %vm2072_vm1, %v2066_v7, 0.0  ;;  %v2329_v24 = vmul.f32 %v2067_v27, %v2067_v27 }
 0x199   :  { %v1997_v41 = vadd.f32 %v1922_v9, %v1288_v61  ;;  %v1299_v39 = vadd.f32 %v2961_v29, %v3885_v4  ;;  %2130 = vst.msk [vmem:[#allocation5 + $0x1c8] sm:$0xff] %vm2072_vm1, %v2065_v17  ;;  %v2250_v21 = vsel %vm2072_vm1, %v2065_v17, 0.0  ;;  %v2327_v12 = vmul.f32 %v2065_v17, %v2065_v17 }
 0x19a   :  { %v2070_v13 = vadd.f32 %v3745_v34, %v1999_v20  ;;  %v1290_v11 = vpop.f32.mrf.mxu1  ;;  %v2446_v54 = vadd.f32 %v2445_v43, %v2444_v10  ;;  %v2251_v28 = vadd.f32 %v2250_v21, %v2249_v52  ;;  %v2449_v57 = vsel %vm2072_vm1, %v2328_v40, 0.0  ;;  %v1925_v45 = vpop.f32.mrf.mxu0 }
 0x19b   :  { %v2068_v30 = vadd.f32 %v3745_v34, %v1997_v41  ;;  %v2000_v26 = vadd.f32 %v3031_v5, %v1299_v39  ;;  %v2447_v22 = vsel %vm2072_vm1, %v2327_v12, 0.0  ;;  %v1291_v44 = vadd.f32 %v1290_v11, %v3886_v31 }
 0x19c   :  { %2135 = vst.msk [vmem:[#allocation5 + $0x1f0] sm:$0xff] %vm2072_vm1, %v2070_v13  ;;  %v2253_v63 = vadd.f32 %v2252_v42, %v2251_v28  ;;  %v2448_v55 = vadd.f32 %v2447_v22, %v2446_v54  ;;  %v2254_v18 = vsel %vm2072_vm1, %v2067_v27, 0.0  ;;  %v2451_v33 = vsel %vm2072_vm1, %v2329_v24, 0.0 }
 0x19d   :  { %2133 = vst.msk [vmem:[#allocation5 + $0x1e0] sm:$0xff] %vm2072_vm1, %v2068_v30  ;;  %v2330_v53 = vmul.f32 %v2068_v30, %v2068_v30  ;;  %v2071_v56 = vadd.f32 %v3745_v34, %v2000_v26  ;;  %v1998_v36 = vadd.f32 %v1925_v45, %v1291_v44  ;;  %v2256_v46 = vsel %vm2072_vm1, %v2068_v30, 0.0 }
 0x19e   :  { %v2450_v23 = vadd.f32 %v2449_v57, %v2448_v55  ;;  %v2255_v7 = vadd.f32 %v2254_v18, %v2253_v63  ;;  %v2332_v35 = vmul.f32 %v2070_v13, %v2070_v13 }
 0x19f   :  { %2136 = vst.msk [vmem:[#allocation5 + $0x1f8] sm:$0xff] %vm2072_vm1, %v2071_v56  ;;  %v2069_v59 = vadd.f32 %v3745_v34, %v1998_v36  ;;  %v2453_v58 = vsel %vm2072_vm1, %v2330_v53, 0.0 }
 0x1a0   :  { %v2257_v2 = vadd.f32 %v2256_v46, %v2255_v7  ;;  %v2452_v15 = vadd.f32 %v2451_v33, %v2450_v23 }
 0x1a1   :  { %2134 = vst.msk [vmem:[#allocation5 + $0x1e8] sm:$0xff] %vm2072_vm1, %v2069_v59  ;;  %v2258_v32 = vsel %vm2072_vm1, %v2069_v59, 0.0  ;;  %v2331_v16 = vmul.f32 %v2069_v59, %v2069_v59 }
 0x1a2   :  { %v2454_v14 = vadd.f32 %v2453_v58, %v2452_v15  ;;  %v2259_v60 = vadd.f32 %v2258_v32, %v2257_v2 }
 0x1a3   :  { %3182 = shalt.err (!%p3179_p9)
}
 0x1a4   :  { %s3221_s18 = smov 128   ;;  %s3222_s19 = smov 8   ;;  %v2260_v34 = vsel %vm2072_vm1, %v2070_v13, 0.0  ;;  %v2333_v8 = vmul.f32 %v2071_v56, %v2071_v56  ;;  %v2455_v51 = vsel %vm2072_vm1, %v2331_v16, 0.0  ;;  %v2457_v49 = vsel %vm2072_vm1, %v2332_v35, 0.0 }
 0x1a5   :  { %2483 = dma.vmem_to_hbm [thread:$0]  %s2478_s16, 8192, %s3843_s3, [#allocation4], %s3221_s18, %s3221_s18, %s3222_s19   ;;  %v2261_v25 = vadd.f32 %v2260_v34, %v2259_v60  ;;  %v2456_v1 = vadd.f32 %v2455_v51, %v2454_v14  ;;  %v2262_v6 = vsel %vm2072_vm1, %v2071_v56, 0.0  ;;  %vm2467_vm2 = vcmask 1040384  }
 0x1a6   :  { %v2459_v37 = vsel %vm2072_vm1, %v2333_v8, 0.0  ;;  %s3223_s3 = smov [#allocation6]   ;;  %vm2469_vm3 = vcmask 1041408  }
 0x1a7   :  { %v2263_v27 = vadd.f32 %v2262_v6, %v2261_v25  ;;  %v2458_v48 = vadd.f32 %v2457_v49, %v2456_v1  ;;  %s2490_s22 = sshll.u32 %s3223_s3, 4  ;;  %s2491_s22 = int_to_ptr.vmem [resolvable:$true] %s2490_s22 }
 0x1a8   :  { %s3191_s23 = scalar_lea.vmem %s2491_s22, 128  ;;  %p3196_p11 = scmp.lt.s32.totalorder %s2491_s22, %s2491_s22 }
 0x1a9   :  { %v2264_v38 = vrot.slane %v2263_v27, 4  ;;  %v2460_v62 = vadd.f32 %v2459_v37, %v2458_v48  ;;  %p3192_p10 = scmp.ne.s32.totalorder %s2491_s22, %s3191_s23  ;;  %p3197_p12 = scmp.lt.s32.totalorder %s3191_s23, %s3191_s23 }
 0x1ab   :  { %v2265_v9 = vadd.f32 %v2264_v38, %v2263_v27  ;;  %v2461_v3 = vrot.slane %v2460_v62, 4  ;;  %p3198_p13 = por %p3197_p12, %p3196_p11 }
 0x1ad   :  { %v2266_v47 = vrot.slane %v2265_v9, 2  ;;  %v2462_v19 = vadd.f32 %v2461_v3, %v2460_v62  ;;  %p3199_p0 = pnand %p3198_p13, %p3192_p10 }
 0x1af   :  { %v2267_v0 = vadd.f32 %v2266_v47, %v2265_v9  ;;  %v2463_v61 = vrot.slane %v2462_v19, 2 }
 0x1b1   :  { %v2268_v40 = vrot.slane %v2267_v0, 1  ;;  %v2464_v50 = vadd.f32 %v2463_v61, %v2462_v19 }
 0x1b3   :  { %v2465_v17 = vrot.slane %v2464_v50, 1  ;;  %v2269_v20 = vadd.f32 %v2268_v40, %v2267_v0 }
 0x1b5   :  { %v2466_v29 = vadd.f32 %v2465_v17, %v2464_v50 }
 0x1b7   :  { %v2468_v52 = vsel %vm2467_vm2, %v2269_v20, %v2466_v29 }
 0x1b8   :  { %v2470_v10 = vsel %vm2469_vm3, %v2468_v52, 0.0 }
 0x1b9   :  { %2471 = vst.msk [vmem:[#allocation6] sm:$0xff] %vm2072_vm1, %v2470_v10 }
 0x1ba   :  { %3202 = shalt.err (!%p3199_p0)
}
 0x1bb   :  { %2493 = dma.vmem_to_hbm [thread:$0]  %s2491_s22, 128, %s3844_s4, [#allocation7]  }
 0x1bc   :  { %3213 = dma.done.wait [#allocation4], 8192  }
 0x1bd   :  { %3214 = vsyncadd [#allocation4], 4294959104 }
 0x1be   :  { %3215 = dma.done.wait [#allocation7], 128  }
 0x1bf   :  { %3216 = vsyncadd [#allocation7], 4294967168 }
 0x1c0   :  { %2500 = vsyncpa [#allocation3], 1 }
 0x1c1   :  { %2501 = vsyncpa [#allocation4], 1 }
 0x1c2   :  { %2502 = vsyncpa [#allocation7], 1 }

</bundles_post_ra>
